<compile_context>
chip_gen: v6e
topology: v6e:2x2x1
jax: 0.10.0
libtpu: 0.0.40
codegen_flags: <defaults>
</compile_context>

<pallas_src>
import functools

import jax
import jax.numpy as jnp
from jax.experimental import pallas as pl
from jax.experimental.pallas import tpu as pltpu

EPS = 1e-5                      # BatchNorm2d default eps
MXU_DTYPE = jnp.bfloat16        # matmul operand dtype (f32 accumulation)
PRE_DTYPE = jnp.bfloat16        # dtype of the pre-activation HBM round-trip


def _const_spec(shape, index_map):
    """BlockSpec for a grid-invariant block; single pipeline buffer if available."""
    if hasattr(pl, "Buffered"):
        try:
            return pl.BlockSpec(shape, index_map, pipeline_mode=pl.Buffered(1))
        except TypeError:
            pass
    return pl.BlockSpec(shape, index_map)


# ----------------------------------------------------------------------------
# Kernel 1: fused "deconv" (mean + logvar branches) for one (image, H-tile):
#   one MXU dot with K = 9*Cin, plus per-tile partial BatchNorm statistics.
#   x_ref:     (Hp, Wp, Cin)    padded NHWC image (batch dim squeezed), f32
#   w_ref:     (9*Cin, C2P)     fused [mean | logvar | zero-pad] weights, bf16
#   b_ref:     (1, C2P)         bias (mean columns only), f32
#   pre_ref:   (th*W, C2P)      fused pre-BN activations for this tile, bf16
#   stats_ref: (2, C2P)         row 0 = sum, row 1 = sum of squares (f32)
# ----------------------------------------------------------------------------
def _deconv_stats_kernel(cin, th, w_sp, x_ref, w_ref, b_ref, pre_ref, stats_ref):
    t = pl.program_id(1)
    h0 = pl.multiple_of(t * th, th)
    xt = x_ref[pl.ds(h0, th + 2), :, :]                     # (th+2, Wp, Cin)
    # Nine shifted views concatenated along the lane axis -> single K=9*Cin dot.
    views = [xt[kh:kh + th, kw:kw + w_sp, :]
             for kh in range(3) for kw in range(3)]          # 9 x (th, W, Cin)
    lhs = jnp.concatenate(views, axis=-1).reshape(th * w_sp, 9 * cin)
    pre = jnp.dot(lhs.astype(MXU_DTYPE), w_ref[...],
                  preferred_element_type=jnp.float32) + b_ref[...]
    pre_ref[...] = pre.astype(pre_ref.dtype)
    stats_ref[0:1, :] = jnp.sum(pre, axis=0, keepdims=True)
    stats_ref[1:2, :] = jnp.sum(pre * pre, axis=0, keepdims=True)


# ----------------------------------------------------------------------------
# Kernel 2: tiled, grid-parallel normalize + nonlinearities.
#   y = pre * scale + shift   (scale/shift fold gamma, beta, mu, var)
#   columns [0, Cout)    -> Sigmoid            (mean branch)
#   columns [Cout, C2P)  -> Hardtanh(-4.5, 0)  (logvar branch + padding)
# Optionally also emits the normalized pre-activation slab (return_pa).
# ----------------------------------------------------------------------------
def _norm_act_kernel(cout, pre_ref, scale_ref, shift_ref, act_ref, *pa_refs):
    y = pre_ref[...].astype(jnp.float32) * scale_ref[...] + shift_ref[...]
    sig = pl.reciprocal(1.0 + jnp.exp(-y))                   # exact (EUP exp)
    ht = jnp.clip(y, -4.5, 0.0)
    col = jax.lax.broadcasted_iota(jnp.int32, y.shape, 1)
    act_ref[...] = jnp.where(col < cout, sig, ht)
    for pa_ref in pa_refs:
        pa_ref[...] = y


# ----------------------------------------------------------------------------
# Tiling helpers
# ----------------------------------------------------------------------------
def _pick_h_tile(h, w, c2p, bytes_per=2):
    """Divisor of H giving a modest pre tile and >=2 H-tiles when possible."""
    limit = 1 << 20                                          # ~1 MiB pre tile
    cands = [th for th in range(1, h + 1)
             if h % th == 0 and ((th * w) % 8 == 0 or th == h)]
    ok = [th for th in cands if th * w * c2p * bytes_per <= limit] or [cands[0]]
    th = max(ok)
    if th == h and h % 2 == 0 and (h // 2) in ok:
        th = h // 2                                          # >=2 grid steps / image
    return th


def _row_tile(m):
    """Largest preferred row tile <= m (ragged tail handled by pl.cdiv grid)."""
    for c in (2048, 1024, 512, 256, 128, 64, 32, 16):
        if m >= c:
            return c
    return max(m, 1)


def _prep_weights(params, cin, cout, c2p):
    """Fuse both ConvTranspose2d weights into one (9*Cin, C2P) slab.

    ConvTranspose2d (stride=1, pad=1, k=3) == standard SAME conv with the
    spatially flipped kernel. (Cin, Cout, kH, kW) -> rows ordered tap-major.
    """
    wm = jnp.transpose(params["w_mean"][:, :, ::-1, ::-1], (2, 3, 0, 1))
    wl = jnp.transpose(params["w_logvar"][:, :, ::-1, ::-1], (2, 3, 0, 1))
    w = jnp.concatenate([wm, wl], axis=-1).reshape(9, cin, 2 * cout)
    w = jnp.pad(w, ((0, 0), (0, 0), (0, c2p - 2 * cout)))
    w2d = w.reshape(9 * cin, c2p).astype(MXU_DTYPE)
    b = jnp.zeros((1, c2p), jnp.float32).at[0, :cout].set(
        params["b_mean"].astype(jnp.float32))
    return w2d, b


# ----------------------------------------------------------------------------
# Forward wrapper
# ----------------------------------------------------------------------------
@functools.partial(jax.jit, static_argnames=("return_pa",))
def deconv_layer_split_forward(x_nchw, params, *, return_pa=False):
    N, Cin, H, W = x_nchw.shape
    Cout = params["w_mean"].shape[1]
    C2 = 2 * Cout
    C2P = max(128, ((C2 + 127) // 128) * 128)       # lane-dense fused channels
    Hp, Wp = H + 2, W + 2
    HW = H * W
    M = N * HW

    # NCHW -> padded NHWC (only host-side prep; no im2col).
    x = jnp.transpose(x_nchw, (0, 2, 3, 1)).astype(jnp.float32)
    xp = jnp.pad(x, ((0, 0), (1, 1), (1, 1), (0, 0)))        # (N, Hp, Wp, Cin)

    w2d, b = _prep_weights(params, Cin, Cout, C2P)

    th = _pick_h_tile(H, W, C2P)
    n_t = H // th
    tile_rows = th * W

    # ---- pass 1: fused deconv matmul + per-tile partial BN stats ----
    cost = pl.CostEstimate(
        flops=2 * M * 9 * Cin * C2P,
        transcendentals=0,
        bytes_accessed=(4 * xp.size + 2 * (9 * Cin * C2P) + 4 * C2P
                        + 2 * M * C2P + 4 * N * n_t * 2 * C2P))

    pre, stats = pl.pallas_call(
        functools.partial(_deconv_stats_kernel, Cin, th, W),
        out_shape=(jax.ShapeDtypeStruct((N, HW, C2P), PRE_DTYPE),
                   jax.ShapeDtypeStruct((N, n_t, 2, C2P), jnp.float32)),
        grid_spec=pltpu.PrefetchScalarGridSpec(
            num_scalar_prefetch=0,
            grid=(N, n_t),
            in_specs=[pl.BlockSpec((None, Hp, Wp, Cin), lambda n, t: (n, 0, 0, 0)),
                      _const_spec((9 * Cin, C2P), lambda n, t: (0, 0)),
                      _const_spec((1, C2P), lambda n, t: (0, 0))],
            out_specs=[pl.BlockSpec((None, tile_rows, C2P), lambda n, t: (n, t, 0)),
                       pl.BlockSpec((None, None, 2, C2P), lambda n, t: (n, t, 0, 0))]),
        compiler_params=pltpu.CompilerParams(
            dimension_semantics=("parallel", "parallel"),
            vmem_limit_bytes=32 * 1024 * 1024),
        cost_estimate=cost,
    )(xp, w2d, b)

    # ---- finalize BatchNorm statistics (tiny per-channel vectors) ----
    sums = jnp.sum(stats, axis=(0, 1))                       # (2, C2P)
    mu = sums[0] / M
    var = jnp.maximum(sums[1] / M - mu * mu, 0.0)            # biased (training)
    gamma = jnp.zeros((C2P,), jnp.float32)
    gamma = gamma.at[:Cout].set(params["bn_gamma_mean"])
    gamma = gamma.at[Cout:C2].set(params["bn_gamma_logvar"])
    beta = jnp.zeros((C2P,), jnp.float32)
    beta = beta.at[:Cout].set(params["bn_beta_mean"])
    beta = beta.at[Cout:C2].set(params["bn_beta_logvar"])
    scale = gamma * jax.lax.rsqrt(var + EPS)
    shift = beta - mu * scale
    scale = scale.reshape(1, C2P)
    shift = shift.reshape(1, C2P)

    # ---- pass 2: tiled normalize + activations over M rows ----
    pre2 = pre.reshape(M, C2P)                               # free leading merge
    tm = _row_tile(M)
    n_rt = pl.cdiv(M, tm)
    out_shapes = [jax.ShapeDtypeStruct((M, C2P), jnp.float32)]
    out_specs = [pl.BlockSpec((tm, C2P), lambda i: (i, 0))]
    if return_pa:
        out_shapes.append(jax.ShapeDtypeStruct((M, C2P), jnp.float32))
        out_specs.append(pl.BlockSpec((tm, C2P), lambda i: (i, 0)))

    outs = pl.pallas_call(
        functools.partial(_norm_act_kernel, Cout),
        out_shape=tuple(out_shapes),
        grid_spec=pltpu.PrefetchScalarGridSpec(
            num_scalar_prefetch=0,
            grid=(n_rt,),
            in_specs=[pl.BlockSpec((tm, C2P), lambda i: (i, 0)),
                      _const_spec((1, C2P), lambda i: (0, 0)),
                      _const_spec((1, C2P), lambda i: (0, 0))],
            out_specs=out_specs),
        compiler_params=pltpu.CompilerParams(
            dimension_semantics=("parallel",),
            vmem_limit_bytes=32 * 1024 * 1024),
    )(pre2, scale, shift)

    act = outs[0]

    # NOTE: returning NCHW (matching the PyTorch module) costs one XLA
    # transpose+slice per output; callers wanting NHWC could skip this.
    def to_nchw(cols):
        return jnp.transpose(cols.reshape(N, H, W, Cout), (0, 3, 1, 2))

    mean_o = to_nchw(act[:, :Cout])
    logvar_o = to_nchw(act[:, Cout:C2])
    if return_pa:
        pa_o = to_nchw(outs[1][:, :Cout])
        return (mean_o, logvar_o), pa_o
    return mean_o, logvar_o


# ----------------------------------------------------------------------------
# Deterministic parameter construction (synthetic; no checkpoints).
# ----------------------------------------------------------------------------
def init_params(key, input_channels, output_channels):
    k1, k2, k3 = jax.random.split(key, 3)
    bound = 1.0 / jnp.sqrt(input_channels * 9.0)
    return {
        # ConvTranspose2d weight layout: (Cin, Cout, kH, kW)
        "w_mean": jax.random.uniform(k1, (input_channels, output_channels, 3, 3),
                                     jnp.float32, -bound, bound),
        "b_mean": jax.random.uniform(k2, (output_channels,),
                                     jnp.float32, -bound, bound),
        "w_logvar": jax.random.uniform(k3, (input_channels, output_channels, 3, 3),
                                       jnp.float32, -bound, bound),
        "bn_gamma_mean": jnp.ones((output_channels,), jnp.float32),
        "bn_beta_mean": jnp.zeros((output_channels,), jnp.float32),
        "bn_gamma_logvar": jnp.ones((output_channels,), jnp.float32),
        "bn_beta_logvar": jnp.zeros((output_channels,), jnp.float32),
    }


# ----------------------------------------------------------------------------
# Pure-JAX reference (for correctness check only).
# ----------------------------------------------------------------------------
def reference_forward(x_nchw, params):
    x = jnp.transpose(x_nchw, (0, 2, 3, 1)).astype(jnp.float32)

    def tconv(wt, bias):
        w_hwio = jnp.transpose(wt[:, :, ::-1, ::-1], (2, 3, 0, 1))
        y = jax.lax.conv_general_dilated(
            x, w_hwio, window_strides=(1, 1), padding="SAME",
            dimension_numbers=("NHWC", "HWIO", "NHWC"))
        return y if bias is None else y + bias

    def bn(y, g, b):
        mu = jnp.mean(y, axis=(0, 1, 2), keepdims=True)
        var = jnp.mean((y - mu) ** 2, axis=(0, 1, 2), keepdims=True)
        return (y - mu) / jnp.sqrt(var + EPS) * g + b

    pa = bn(tconv(params["w_mean"], params["b_mean"]),
            params["bn_gamma_mean"], params["bn_beta_mean"])
    mean = jax.nn.sigmoid(pa)
    logvar = jnp.clip(bn(tconv(params["w_logvar"], None),
                         params["bn_gamma_logvar"], params["bn_beta_logvar"]),
                      -4.5, 0.0)
    return (jnp.transpose(mean, (0, 3, 1, 2)),
            jnp.transpose(logvar, (0, 3, 1, 2)))


if __name__ == "__main__":
    key = jax.random.PRNGKey(0)
    kx, kp = jax.random.split(key)

    N, Cin, H, W = 2, 4, 16, 16
    Cout = 8
    x = jax.random.normal(kx, (N, Cin, H, W), jnp.float32)
    params = init_params(kp, Cin, Cout)

    mean_out, logvar_out = deconv_layer_split_forward(x, params)
    jax.block_until_ready((mean_out, logvar_out))

    mean_ref, logvar_ref = reference_forward(x, params)
    assert mean_out.shape == (N, Cout, H, W)
    assert logvar_out.shape == (N, Cout, H, W)
    # bf16 MXU operands + bf16 pre round-trip -> relaxed tolerance vs f32 ref.
    TOL = 3e-2
    assert float(jnp.max(jnp.abs(mean_out - mean_ref))) < TOL
    assert float(jnp.max(jnp.abs(logvar_out - logvar_ref))) < TOL

    # return_pa path: sigmoid of the returned pre-activation must match mean.
    (mean2, logvar2), pa = deconv_layer_split_forward(x, params, return_pa=True)
    jax.block_until_ready(pa)
    assert pa.shape == (N, Cout, H, W)
    assert float(jnp.max(jnp.abs(jax.nn.sigmoid(pa) - mean_ref))) < TOL
    assert float(jnp.max(jnp.abs(logvar2 - logvar_ref))) < TOL

    print("KERNEL_OK")
</pallas_src>

<mosaic_0001>
module attributes {stable_mosaic.version = 11 : i64} {
  func.func @_deconv_stats_kernel(%arg0: i32, %arg1: i32, %arg2: memref<1x18x18x4xf32, #tpu.memory_space<vmem>>, %arg3: memref<36x128xbf16, #tpu.memory_space<vmem>>, %arg4: memref<1x128xf32, #tpu.memory_space<vmem>>, %arg5: memref<1x128x128xbf16, #tpu.memory_space<vmem>>, %arg6: memref<1x1x2x128xf32, #tpu.memory_space<vmem>>) attributes {dimension_semantics = [#tpu.dimension_semantics<parallel>, #tpu.dimension_semantics<parallel>], iteration_bounds = array<i64: 2, 2>, scalar_prefetch = 0 : i64, scratch_operands = 0 : i64, tpu.core_type = #tpu.core_type<tc>, window_params = [{transform_indices = @transform_0, window_bounds = array<i64: 1, 18, 18, 4>}, {pipeline_mode = #tpu.pipeline_mode<synchronous>, transform_indices = @transform_1, window_bounds = array<i64: 36, 128>}, {pipeline_mode = #tpu.pipeline_mode<synchronous>, transform_indices = @transform_2, window_bounds = array<i64: 1, 128>}, {transform_indices = @transform_3, window_bounds = array<i64: 1, 128, 128>}, {transform_indices = @transform_4, window_bounds = array<i64: 1, 1, 2, 128>}]} {
    %c8_i32 = arith.constant 8 : i32
    %0 = arith.muli %arg1, %c8_i32 : i32
    %1 = tpu.assume_multiple %0, 8 : i32
    %c0 = arith.constant 0 : index
    %2 = arith.index_cast %1 : i32 to index
    %c0_0 = arith.constant 0 : index
    %c0_1 = arith.constant 0 : index
    %3 = vector.load %arg2[%c0, %2, %c0_0, %c0_1] : memref<1x18x18x4xf32, #tpu.memory_space<vmem>>, vector<1x10x18x4xf32>
    %4 = vector.shape_cast %3 : vector<1x10x18x4xf32> to vector<10x18x4xf32>
    %5 = vector.extract_strided_slice %4 {offsets = [0, 0, 0], sizes = [8, 16, 4], strides = [1, 1, 1]} : vector<10x18x4xf32> to vector<8x16x4xf32>
    %6 = vector.extract_strided_slice %4 {offsets = [0, 1, 0], sizes = [8, 16, 4], strides = [1, 1, 1]} : vector<10x18x4xf32> to vector<8x16x4xf32>
    %7 = vector.extract_strided_slice %4 {offsets = [0, 2, 0], sizes = [8, 16, 4], strides = [1, 1, 1]} : vector<10x18x4xf32> to vector<8x16x4xf32>
    %8 = vector.extract_strided_slice %4 {offsets = [1, 0, 0], sizes = [8, 16, 4], strides = [1, 1, 1]} : vector<10x18x4xf32> to vector<8x16x4xf32>
    %9 = vector.extract_strided_slice %4 {offsets = [1, 1, 0], sizes = [8, 16, 4], strides = [1, 1, 1]} : vector<10x18x4xf32> to vector<8x16x4xf32>
    %10 = vector.extract_strided_slice %4 {offsets = [1, 2, 0], sizes = [8, 16, 4], strides = [1, 1, 1]} : vector<10x18x4xf32> to vector<8x16x4xf32>
    %11 = vector.extract_strided_slice %4 {offsets = [2, 0, 0], sizes = [8, 16, 4], strides = [1, 1, 1]} : vector<10x18x4xf32> to vector<8x16x4xf32>
    %12 = vector.extract_strided_slice %4 {offsets = [2, 1, 0], sizes = [8, 16, 4], strides = [1, 1, 1]} : vector<10x18x4xf32> to vector<8x16x4xf32>
    %13 = vector.extract_strided_slice %4 {offsets = [2, 2, 0], sizes = [8, 16, 4], strides = [1, 1, 1]} : vector<10x18x4xf32> to vector<8x16x4xf32>
    %14 = tpu.concatenate %5, %6, %7, %8, %9, %10, %11, %12, %13 in 2 : vector<8x16x4xf32>, vector<8x16x4xf32>, vector<8x16x4xf32>, vector<8x16x4xf32>, vector<8x16x4xf32>, vector<8x16x4xf32>, vector<8x16x4xf32>, vector<8x16x4xf32>, vector<8x16x4xf32> -> vector<8x16x36xf32>
    %15 = vector.shape_cast %14 : vector<8x16x36xf32> to vector<128x36xf32>
    %16 = arith.truncf %15 : vector<128x36xf32> to vector<128x36xbf16>
    %c0_2 = arith.constant 0 : index
    %c0_3 = arith.constant 0 : index
    %17 = vector.load %arg3[%c0_2, %c0_3] : memref<36x128xbf16, #tpu.memory_space<vmem>>, vector<36x128xbf16>
    %cst = arith.constant dense<0.000000e+00> : vector<128x128xf32>
    %18 = tpu.matmul %16, %17, %cst {dimension_numbers = #tpu.dot_dimension_numbers<[1], [0], [0], [1], [0, 0, 1, 1], [], []>} : vector<128x36xbf16>, vector<36x128xbf16>, vector<128x128xf32> -> vector<128x128xf32>
    %c0_4 = arith.constant 0 : index
    %c0_5 = arith.constant 0 : index
    %19 = vector.load %arg4[%c0_4, %c0_5] : memref<1x128xf32, #tpu.memory_space<vmem>>, vector<1x128xf32>
    %20 = vector.broadcast %19 : vector<1x128xf32> to vector<128x128xf32>
    %21 = arith.addf %18, %20 : vector<128x128xf32>
    %22 = arith.truncf %21 : vector<128x128xf32> to vector<128x128xbf16>
    %c0_6 = arith.constant 0 : index
    %c0_7 = arith.constant 0 : index
    %c0_8 = arith.constant 0 : index
    %23 = vector.load %arg5[%c0_6, %c0_7, %c0_8] : memref<1x128x128xbf16, #tpu.memory_space<vmem>>, vector<1x128x128xbf16>
    %24 = vector.shape_cast %23 : vector<1x128x128xbf16> to vector<128x128xbf16>
    %25 = vector.shape_cast %22 : vector<128x128xbf16> to vector<1x128x128xbf16>
    tpu.vector_store %arg5[%c0_6, %c0_7, %c0_8], %25 {strides = array<i32>} : memref<1x128x128xbf16, #tpu.memory_space<vmem>>, vector<1x128x128xbf16>,
    %cst_9 = arith.constant dense<0.000000e+00> : vector<128xf32>
    %26 = vector.multi_reduction <add>, %21, %cst_9 [0] : vector<128x128xf32> to vector<128xf32>
    %27 = vector.shape_cast %26 : vector<128xf32> to vector<1x128xf32>
    %c0_10 = arith.constant 0 : index
    %c0_11 = arith.constant 0 : index
    %c0_12 = arith.constant 0 : index
    %c0_13 = arith.constant 0 : index
    %28 = vector.load %arg6[%c0_10, %c0_11, %c0_12, %c0_13] : memref<1x1x2x128xf32, #tpu.memory_space<vmem>>, vector<1x1x1x128xf32>
    %29 = vector.shape_cast %28 : vector<1x1x1x128xf32> to vector<1x128xf32>
    %30 = vector.shape_cast %27 : vector<1x128xf32> to vector<1x1x1x128xf32>
    tpu.vector_store %arg6[%c0_10, %c0_11, %c0_12, %c0_13], %30 {strides = array<i32>} : memref<1x1x2x128xf32, #tpu.memory_space<vmem>>, vector<1x1x1x128xf32>,
    %31 = arith.mulf %21, %21 : vector<128x128xf32>
    %cst_14 = arith.constant dense<0.000000e+00> : vector<128xf32>
    %32 = vector.multi_reduction <add>, %31, %cst_14 [0] : vector<128x128xf32> to vector<128xf32>
    %33 = vector.shape_cast %32 : vector<128xf32> to vector<1x128xf32>
    %c0_15 = arith.constant 0 : index
    %c0_16 = arith.constant 0 : index
    %c1 = arith.constant 1 : index
    %c0_17 = arith.constant 0 : index
    %34 = vector.load %arg6[%c0_15, %c0_16, %c1, %c0_17] : memref<1x1x2x128xf32, #tpu.memory_space<vmem>>, vector<1x1x1x128xf32>
    %35 = vector.shape_cast %34 : vector<1x1x1x128xf32> to vector<1x128xf32>
    %36 = vector.shape_cast %33 : vector<1x128xf32> to vector<1x1x1x128xf32>
    tpu.vector_store %arg6[%c0_15, %c0_16, %c1, %c0_17], %36 {strides = array<i32>} : memref<1x1x2x128xf32, #tpu.memory_space<vmem>>, vector<1x1x1x128xf32>,
    return
  }
  func.func @transform_0(%arg0: i32, %arg1: i32) -> (i32, i32, i32, i32) {
    %c0_i32 = arith.constant 0 : i32
    %c0_i32_0 = arith.constant 0 : i32
    %c0_i32_1 = arith.constant 0 : i32
    %c0_i32_2 = arith.constant 0 : i32
    return %arg0, %c0_i32, %c0_i32_0, %c0_i32_1 : i32, i32, i32, i32
  }
  func.func @transform_1(%arg0: i32, %arg1: i32) -> (i32, i32) {
    %c0_i32 = arith.constant 0 : i32
    %c0_i32_0 = arith.constant 0 : i32
    %c0_i32_1 = arith.constant 0 : i32
    return %c0_i32, %c0_i32_0 : i32, i32
  }
  func.func @transform_2(%arg0: i32, %arg1: i32) -> (i32, i32) {
    %c0_i32 = arith.constant 0 : i32
    %c0_i32_0 = arith.constant 0 : i32
    %c0_i32_1 = arith.constant 0 : i32
    return %c0_i32, %c0_i32_0 : i32, i32
  }
  func.func @transform_3(%arg0: i32, %arg1: i32) -> (i32, i32, i32) {
    %c0_i32 = arith.constant 0 : i32
    %c0_i32_0 = arith.constant 0 : i32
    return %arg0, %arg1, %c0_i32 : i32, i32, i32
  }
  func.func @transform_4(%arg0: i32, %arg1: i32) -> (i32, i32, i32, i32) {
    %c0_i32 = arith.constant 0 : i32
    %c0_i32_0 = arith.constant 0 : i32
    %c0_i32_1 = arith.constant 0 : i32
    return %arg0, %arg1, %c0_i32, %c0_i32_0 : i32, i32, i32, i32
  }
}

module attributes {stable_mosaic.version = 11 : i64} {
  func.func @_norm_act_kernel(%arg0: i32, %arg1: memref<512x128xbf16, #tpu.memory_space<vmem>>, %arg2: memref<1x128xf32, #tpu.memory_space<vmem>>, %arg3: memref<1x128xf32, #tpu.memory_space<vmem>>, %arg4: memref<512x128xf32, #tpu.memory_space<vmem>>) attributes {dimension_semantics = [#tpu.dimension_semantics<parallel>], iteration_bounds = array<i64: 1>, scalar_prefetch = 0 : i64, scratch_operands = 0 : i64, tpu.core_type = #tpu.core_type<tc>, window_params = [{transform_indices = @transform_0, window_bounds = array<i64: 512, 128>}, {pipeline_mode = #tpu.pipeline_mode<synchronous>, transform_indices = @transform_1, window_bounds = array<i64: 1, 128>}, {pipeline_mode = #tpu.pipeline_mode<synchronous>, transform_indices = @transform_2, window_bounds = array<i64: 1, 128>}, {transform_indices = @transform_3, window_bounds = array<i64: 512, 128>}]} {
    %c0 = arith.constant 0 : index
    %c0_0 = arith.constant 0 : index
    %0 = vector.load %arg1[%c0, %c0_0] : memref<512x128xbf16, #tpu.memory_space<vmem>>, vector<512x128xbf16>
    %1 = arith.extf %0 : vector<512x128xbf16> to vector<512x128xf32>
    %c0_1 = arith.constant 0 : index
    %c0_2 = arith.constant 0 : index
    %2 = vector.load %arg2[%c0_1, %c0_2] : memref<1x128xf32, #tpu.memory_space<vmem>>, vector<1x128xf32>
    %3 = vector.broadcast %2 : vector<1x128xf32> to vector<512x128xf32>
    %4 = arith.mulf %1, %3 : vector<512x128xf32>
    %c0_3 = arith.constant 0 : index
    %c0_4 = arith.constant 0 : index
    %5 = vector.load %arg3[%c0_3, %c0_4] : memref<1x128xf32, #tpu.memory_space<vmem>>, vector<1x128xf32>
    %6 = vector.broadcast %5 : vector<1x128xf32> to vector<512x128xf32>
    %7 = arith.addf %4, %6 : vector<512x128xf32>
    %cst = arith.constant 0.000000e+00 : f32
    %8 = vector.broadcast %cst : f32 to vector<512x128xf32>
    %9 = arith.subf %8, %7 : vector<512x128xf32>
    %10 = math.exp %9 : vector<512x128xf32>
    %cst_5 = arith.constant 1.000000e+00 : f32
    %11 = vector.broadcast %cst_5 : f32 to vector<512x128xf32>
    %12 = arith.addf %11, %10 : vector<512x128xf32>
    %13 = tpu.reciprocal %12 : vector<512x128xf32> -> vector<512x128xf32>
    %cst_6 = arith.constant -4.500000e+00 : f32
    %cst_7 = arith.constant 0.000000e+00 : f32
    %14 = vector.broadcast %cst_6 : f32 to vector<512x128xf32>
    %15 = arith.maximumf %14, %7 : vector<512x128xf32>
    %16 = vector.broadcast %cst_7 : f32 to vector<512x128xf32>
    %17 = arith.minimumf %16, %15 : vector<512x128xf32>
    %18 = tpu.iota {dimensions = array<i32: 1>} : vector<512x128xi32>
    %c8_i32 = arith.constant 8 : i32
    %19 = vector.broadcast %c8_i32 : i32 to vector<512x128xi32>
    %20 = arith.cmpi slt, %18, %19 : vector<512x128xi32>
    %21 = arith.select %20, %13, %17 : vector<512x128xi1>, vector<512x128xf32>
    %c0_8 = arith.constant 0 : index
    %c0_9 = arith.constant 0 : index
    %22 = vector.load %arg4[%c0_8, %c0_9] : memref<512x128xf32, #tpu.memory_space<vmem>>, vector<512x128xf32>
    tpu.vector_store %arg4[%c0_8, %c0_9], %21 {strides = array<i32>} : memref<512x128xf32, #tpu.memory_space<vmem>>, vector<512x128xf32>,
    return
  }
  func.func @transform_0(%arg0: i32) -> (i32, i32) {
    %c0_i32 = arith.constant 0 : i32
    %c0_i32_0 = arith.constant 0 : i32
    return %arg0, %c0_i32 : i32, i32
  }
  func.func @transform_1(%arg0: i32) -> (i32, i32) {
    %c0_i32 = arith.constant 0 : i32
    %c0_i32_0 = arith.constant 0 : i32
    %c0_i32_1 = arith.constant 0 : i32
    return %c0_i32, %c0_i32_0 : i32, i32
  }
  func.func @transform_2(%arg0: i32) -> (i32, i32) {
    %c0_i32 = arith.constant 0 : i32
    %c0_i32_0 = arith.constant 0 : i32
    %c0_i32_1 = arith.constant 0 : i32
    return %c0_i32, %c0_i32_0 : i32, i32
  }
  func.func @transform_3(%arg0: i32) -> (i32, i32) {
    %c0_i32 = arith.constant 0 : i32
    %c0_i32_0 = arith.constant 0 : i32
    return %arg0, %c0_i32 : i32, i32
  }
}

</mosaic_0001>

<bundles_post_ra>
// kernel: deconv_layer_split_forward.2
= control target key start
LH: loop header
LB: loop body
LE: loop exit
PB: predicated region body
PF: predicated region fallthrough
CT: control target
= control target key end

     0   :  { %s1954_s15 = smov 0   ;;  %s1956_s16 = smov 0   ;;  %s2553_s0 = inlined_call_operand.vmem [shape: f32[2,18,18,4], index: 0, kind: input, shape index: {}]   ;;  %s2554_s1 = inlined_call_operand.vmem [shape: bf16[36,128], index: 1, kind: input, shape index: {}]   ;;  %s2555_s2 = inlined_call_operand.vmem [shape: f32[1,128], index: 2, kind: input, shape index: {}]   ;;  %s2556_s3 = inlined_call_operand.vmem [shape: bf16[2,256,128], index: 3, kind: output, shape index: {0}]   ;;  %s2557_s4 = inlined_call_operand.vmem [shape: f32[2,2,2,128], index: 4, kind: output, shape index: {1}]  }
   0x1   :  { %s1958_s17 = smov 0   ;;  %s1960_s18 = smov 0  }
   0x2   :  { %s1962_s19 = smov 0  }
   0x3 LB: > { %s24_s20 = sadd.s32 1, %s1911_s17  ;;  %s27_s21 = sadd.s32 1, %s1915_s18  ;;  %s1919_s19 = sphi %s1962_s19, %s15_s19   ;;  %s1915_s18 = sphi %s1960_s18, %s2561_s18   ;;  %s1911_s17 = sphi %s1958_s17, %s2560_s17   ;;  %s1907_s16 = sphi %s1956_s16, %s2559_s16   ;;  %s1903_s15 = sphi %s1954_s15, %s2558_s15  }
   0x4   : > { %p25_p0 = scmp.ge.s32.totalorder %s24_s20, 2  ;;  %p1366_p1 = scmp.ge.s32.totalorder %s1919_s19, 1 }
   0x5   : > { %p181_p2 = scmp.lt.s32.totalorder %s1919_s19, 5 }
   0x6   : > { %s2563_s20 = smov (%p25_p0, %s24_s20), 0  ;;  %s2565_s21 = smov (!%p25_p0, %s27_s21), %s1915_s18 }
   0x7   : > { %p182_p3 = pnand %p1366_p1, %p181_p2  ;;  %p29_p4 = scmp.ge.s32.totalorder %s2565_s21, 2 }
   0x8   : > { %p219_p5 = scmp.lt.s32.totalorder (!%p182_p3), %s1907_s16, 1  ;;  %s1374_s22 = smul.u32 (!%p182_p3), 192, %s1903_s15 }
   0x9   : > { %s2567_s21 = smov (%p29_p4, %s2565_s21), 0  ;;  %185 = sbr.rel (%p182_p3) target bundleno = 491 (0x1eb), region = 32 }
   0xa   : > { %s1921_s28 = smov (!%p182_p3), 12   ;;  %s1922_s29 = smov (!%p182_p3), 8  }
   0xb   : > { %s1923_s30 = smov (!%p182_p3), 4   ;;  %s1924_s5 = smov (!%p182_p3), 16  }
   0xc   : > { %s1925_s6 = smov (!%p182_p3), 20   ;;  %s1926_s7 = smov (!%p182_p3), 24  }
   0xd   : > { %s1927_s8 = smov (!%p182_p3), 28   ;;  %s1928_s9 = smov (!%p182_p3), 32  }
   0xe   : > { %s2569_s16 = smov (!%p219_p5, %s1907_s16), 1  ;;  %vm389_vm0 = vcmask 1045504   ;;  %vm300_vm1 = vcmask 1046528   ;;  %vm988_vm2 = vcmask 1041408   ;;  %vm792_vm3 = vcmask 31744   ;;  %p236_p7 = scmp.lt.s32.totalorder %s1903_s15, 1 }
   0xf   : > { %s1509_s23 = smul.u32 432, %s2569_s16  ;;  %vm809_vm4 = vcmask 64512   ;;  %vm826_vm5 = vcmask 97280   ;;  %vm843_vm6 = vcmask 130048   ;;  %vm860_vm7 = vcmask 162816   ;;  %s1369_s24 = sshll.u32 %s2569_s16, 5 }
  0x10   : > { %vm877_vm8 = vcmask 195584   ;;  %vm894_vm9 = vcmask 228352   ;;  %vm911_vm10 = vcmask 261120   ;;  %vm963_vm11 = vcmask 293888  }
  0x11   : > { %s223_s26 = scalar_lea.vmem %s2553_s0, %s1509_s23  ;;  %s1368_s23 = sshll.u32 %s1903_s15, 4 }
  0x12   : > { %s1993_s27 = scalar_lea.vmem %s223_s26, %s1374_s22  ;;  %p227_p6 = scmp.lt.s32.totalorder %s1368_s23, 31 }
  0x13   : > { %v1996_v0 = vld [vmem:[%s1993_s27 + $0x30] sm:$0xff]  ;;  %v1999_v1 = vld [vmem:[%s1993_s27 + $0x38] sm:$0xff]  ;;  %v2009_v4 = vld [vmem:[%s1993_s27 + $0x20] sm:$0xff]  ;;  %s2573_s15 = smov (!%p236_p7, %s1903_s15), 1 }
  0x14   : > { %v2002_v2 = vld [vmem:[%s1993_s27 + $0x18] sm:$0xff]  ;;  %v2006_v3 = vpack.i.bf16 %v1999_v1, %v1996_v0  ;;  %v2012_v5 = vld [vmem:[%s1993_s27] sm:$0xff]  ;;  %v2015_v6 = vld [vmem:[%s1993_s27 + $0x8] sm:$0xff]  ;;  %v311_v9 = vrot.slane %v1996_v0, 1  ;;  %v396_v19 = vrot.slane %v2009_v4, 2  ;;  %v307_v22 = vrot.slane %v2009_v4, 1 }
  0x15   : > { %v395_v7 = vrot.slane %v2002_v2, 2  ;;  %v306_v8 = vrot.slane %v2002_v2, 1  ;;  %v1558_v10 = vpack.i.bf16 %v2009_v4, %v2002_v2  ;;  %v248_v11 = vld [vmem:[%s1993_s27 + $0x10] sm:$0x3]  ;;  %v390_v12 = vrot.slane %v2012_v5, 2  ;;  %v2056_v46 = vld [vmem:[%s1993_s27 + $0x48] sm:$0xff] }
  0x16   : > { %v391_v13 = vrot.slane %v2015_v6, 2  ;;  %v301_v14 = vrot.slane %v2012_v5, 1  ;;  %1564 = vrot.lane.b32.xlu1 %v2006_v3, %s1921_s28  ;;  %v393_v15 = vrot.slane %v248_v11, 2  ;;  %v302_v16 = vrot.slane %v2015_v6, 1  ;;  %v251_v18 = vld [vmem:[%s1993_s27 + $0x28] sm:$0x3] }
  0x17   : > { %v304_v17 = vrot.slane %v248_v11, 1  ;;  %1559 = vrot.lane.b32.xlu0 %v1558_v10, %s1921_s28  ;;  %v398_v21 = vrot.slane %v251_v18, 2  ;;  %v309_v23 = vrot.slane %v251_v18, 1  ;;  %v254_v24 = vld [vmem:[%s1993_s27 + $0x40] sm:$0x3]  ;;  %v397_v28 = vsel %vm389_vm0, %v395_v7, %v396_v19  ;;  %v2059_v47 = vld [vmem:[%s1993_s27 + $0x50] sm:$0xff] }
  0x18   : > { %v392_v20 = vsel %vm389_vm0, %v390_v12, %v391_v13  ;;  %v394_v25 = vsel %vm389_vm0, %v391_v13, %v393_v15  ;;  %v303_v26 = vsel %vm300_vm1, %v301_v14, %v302_v16  ;;  %v308_v32 = vsel %vm300_vm1, %v306_v8, %v307_v22  ;;  %v257_v48 = vld [vmem:[%s1993_s27 + $0x58] sm:$0x3]  ;;  %v2081_v58 = vld [vmem:[%s1993_s27 + $0x60] sm:$0xff]  ;;  %v2084_v59 = vld [vmem:[%s1993_s27 + $0x90] sm:$0xff]  ;;  %s2571_s23 = smov (!%p227_p6, %s1368_s23), 31 }
  0x19   : > { %v305_v27 = vsel %vm300_vm1, %v302_v16, %v304_v17  ;;  %v1578_v29 = vpack.i.bf16 %v394_v25, %v392_v20  ;;  %v399_v31 = vsel %vm389_vm0, %v396_v19, %v398_v21  ;;  %v310_v33 = vsel %vm300_vm1, %v307_v22, %v309_v23  ;;  %v2087_v61 = vld [vmem:[%s1993_s27 + $0x68] sm:$0xff]  ;;  %v2090_v62 = vld [vmem:[%s1993_s27 + $0x98] sm:$0xff]  ;;  %v266_v63 = vld [vmem:[%s1993_s27 + $0xa0] sm:$0x3]  ;;  %s230_s25 = sadd.s32 %s1369_s24, %s2571_s23 }
  0x1a   : > { %v1568_v30 = vpack.i.bf16 %v305_v27, %v303_v26  ;;  %v312_v34 = vrot.slane %v1999_v1, 1  ;;  %v314_v35 = vrot.slane %v254_v24, 1  ;;  %v1583_v36 = vpack.i.bf16 %v399_v31, %v397_v28  ;;  %v2107_v13 = vld [vmem:[%s1993_s27 + $0xa8] sm:$0xff]  ;;  %v2113_v16 = vld [vmem:[%s1993_s27 + $0xb0] sm:$0xff]  ;;  %v269_v17 = vld [vmem:[%s1993_s27 + $0xb8] sm:$0x3] }
  0x1b   : > { %1579 = vrot.lane.b32.xlu1 %v1578_v29, %s1922_s29  ;;  %v1573_v37 = vpack.i.bf16 %v310_v33, %v308_v32  ;;  %v400_v38 = vrot.slane %v1996_v0, 2  ;;  %v401_v41 = vrot.slane %v1999_v1, 2  ;;  %v403_v42 = vrot.slane %v254_v24, 2  ;;  %v2138_v32 = vld [vmem:[%s1993_s27 + $0xc0] sm:$0xff] }
  0x1c   : > { %1569 = vrot.lane.b32.xlu0 %v1568_v30, %s1923_s30  ;;  %v313_v39 = vsel %vm300_vm1, %v311_v9, %v312_v34  ;;  %v315_v40 = vsel %vm300_vm1, %v312_v34, %v314_v35  ;;  %v316_v50 = vrot.slane %v2056_v46, 1  ;;  %v317_v51 = vrot.slane %v2059_v47, 1  ;;  %v2133_v30 = vld [vmem:[%s1993_s27 + $0x70] sm:$0x3] }
  0x1d   : > { %v2051_v43 = vpack.i.bf16 %v315_v40, %v313_v39  ;;  %v402_v44 = vsel %vm389_vm0, %v400_v38, %v401_v41  ;;  %v404_v45 = vsel %vm389_vm0, %v401_v41, %v403_v42  ;;  %v319_v52 = vrot.slane %v257_v48, 1  ;;  %v272_v38 = vld [vmem:[%s1993_s27 + $0xd0] sm:$0x3] }
  0x1e   : > { %v2065_v49 = vpack.i.bf16 %v404_v45, %v402_v44  ;;  %v2074_v53 = vpack.i.bf16 %v2059_v47, %v2056_v46  ;;  %v318_v54 = vsel %vm300_vm1, %v316_v50, %v317_v51  ;;  %v405_v56 = vrot.slane %v2056_v46, 2 }
  0x1f   : > { %1584 = vrot.lane.b32.xlu1 %v1583_v36, %s1922_s29  ;;  %v320_v55 = vsel %vm300_vm1, %v317_v51, %v319_v52  ;;  %v406_v57 = vrot.slane %v2059_v47, 2  ;;  %v408_v60 = vrot.slane %v257_v48, 2  ;;  %v331_v8 = vrot.slane %v2084_v59, 1 }
  0x20   : > { %1574 = vrot.lane.b32.xlu0 %v1573_v37, %s1923_s30  ;;  %v2097_v7 = vpack.i.bf16 %v320_v55, %v318_v54  ;;  %v2103_v10 = vpack.i.bf16 %v2087_v61, %v2081_v58  ;;  %v332_v11 = vrot.slane %v2090_v62, 1  ;;  %v334_v12 = vrot.slane %v266_v63, 1  ;;  %v2167_v55 = vld [vmem:[%s1993_s27 + $0xd8] sm:$0xff] }
  0x21   : > { %v407_v9 = vsel %vm389_vm0, %v405_v56, %v406_v57  ;;  %v409_v14 = vsel %vm389_vm0, %v406_v57, %v408_v60  ;;  %v420_v15 = vrot.slane %v2084_v59, 2  ;;  %v321_v18 = vrot.slane %v2081_v58, 1 }
  0x22   : > { %v333_v19 = vsel %vm300_vm1, %v331_v8, %v332_v11  ;;  %v335_v20 = vsel %vm300_vm1, %v332_v11, %v334_v12  ;;  %v423_v21 = vrot.slane %v266_v63, 2  ;;  %v322_v22 = vrot.slane %v2087_v61, 1  ;;  %v275_v63 = vld [vmem:[%s1993_s27 + $0xe8] sm:$0x3] }
  0x23   : > { %1594 = vrot.lane.b32.xlu1 %v2051_v43, %s1924_s5  ;;  %v2124_v23 = vpack.i.bf16 %v335_v20, %v333_v19  ;;  %v336_v25 = vrot.slane %v2107_v13, 1  ;;  %v2128_v26 = vpack.i.bf16 %v409_v14, %v407_v9  ;;  %v337_v28 = vrot.slane %v2113_v16, 1 }
  0x24   : > { %1589 = vrot.lane.b32.xlu0 %v1573_v37, %s1924_s5  ;;  %v339_v29 = vrot.slane %v269_v17, 1  ;;  %v425_v35 = vrot.slane %v2107_v13, 2  ;;  %v2145_v37 = vld [vmem:[%s1993_s27 + $0xc8] sm:$0xff]  ;;  %v428_v40 = vrot.slane %v269_v17, 2  ;;  %v324_v41 = vrot.slane %v2133_v30, 1 }
  0x25   : > { %v338_v33 = vsel %vm300_vm1, %v336_v25, %v337_v28  ;;  %v529_v44 = vrot.slane %v2138_v32, 1  ;;  %v530_v48 = vrot.slane %v2145_v37, 1  ;;  %v532_v50 = vrot.slane %v272_v38, 1 }
  0x26   : > { %v340_v34 = vsel %vm300_vm1, %v337_v28, %v339_v29  ;;  %v582_v52 = vrot.slane %v2138_v32, 2  ;;  %v583_v54 = vrot.slane %v2145_v37, 2  ;;  %v585_v60 = vrot.slane %v272_v38, 2 }
  0x27   : > { %1604 = vrot.lane.b32.xlu1 %v2065_v49, %s1925_s6  ;;  %v2152_v39 = vpack.i.bf16 %v340_v34, %v338_v33  ;;  %v531_v56 = vsel %vm300_vm1, %v529_v44, %v530_v48  ;;  %v533_v57 = vsel %vm300_vm1, %v530_v48, %v532_v50  ;;  %v410_v14 = vrot.slane %v2081_v58, 2  ;;  %v2229_v44 = vld [vmem:[%s1993_s27 + $0x80] sm:$0xff] }
  0x28   : > { %1599 = vrot.lane.b32.xlu0 %v1583_v36, %s1925_s6  ;;  %v426_v36 = vrot.slane %v2113_v16, 2  ;;  %v2176_v8 = vpack.i.bf16 %v533_v57, %v531_v56  ;;  %v584_v9 = vsel %vm389_vm0, %v582_v52, %v583_v54  ;;  %v739_v17 = vrot.slane %v2167_v55, 2  ;;  %v1880_v48 = vld [vmem:[%s2554_s1] sm:$0xff]  }
  0x29   : > { %v411_v19 = vrot.slane %v2087_v61, 2  ;;  %v742_v28 = vrot.slane %v275_v63, 2  ;;  %v323_v29 = vsel %vm300_vm1, %v321_v18, %v322_v22  ;;  %v325_v33 = vsel %vm300_vm1, %v322_v22, %v324_v41  ;;  %v1879_v18 = vld [vmem:[%s2554_s1 + $0x8] sm:$0xff]  }
  0x2a   : > { %v427_v42 = vsel %vm389_vm0, %v425_v35, %v426_v36  ;;  %v429_v45 = vsel %vm389_vm0, %v426_v36, %v428_v40  ;;  %v413_v34 = vrot.slane %v2133_v30, 2  ;;  %v1673_v38 = vpack.i.bf16 %v325_v33, %v323_v29 }
  0x2b   : > { %1614 = vrot.lane.b32.xlu1 %v2074_v53, %s1926_s7  ;;  %v2162_v51 = vpack.i.bf16 %v429_v45, %v427_v42  ;;  %v412_v40 = vsel %vm389_vm0, %v410_v14, %v411_v19  ;;  %v2226_v42 = vld [vmem:[%s1993_s27 + $0x78] sm:$0xff]  ;;  %v263_v45 = vld [vmem:[%s1993_s27 + $0x88] sm:$0x3]  ;;  %v327_v52 = vrot.slane %v2229_v44, 1 }
  0x2c   : > { %1609 = vrot.lane.b32.xlu0 %v2006_v3, %s1926_s7  ;;  %v421_v3 = vrot.slane %v2090_v62, 2  ;;  %v414_v41 = vsel %vm389_vm0, %v411_v19, %v413_v34  ;;  %v326_v50 = vrot.slane %v2226_v42, 1  ;;  %v1693_v56 = vpack.i.bf16 %v2229_v44, %v2226_v42 }
  0x2e   : > { %v422_v24 = vsel %vm389_vm0, %v420_v15, %v421_v3  ;;  %v424_v27 = vsel %vm389_vm0, %v421_v3, %v423_v21  ;;  %v586_v15 = vsel %vm389_vm0, %v583_v54, %v585_v60  ;;  %v686_v3 = vrot.slane %v2167_v55, 1 }
  0x2f   : > { %1624 = vrot.lane.b32.xlu1 %v2097_v7, %s1927_s8  ;;  %v2135_v31 = vpack.i.bf16 %v424_v27, %v422_v24  ;;  %v2186_v20 = vpack.i.bf16 %v586_v15, %v584_v9  ;;  %v689_v21 = vrot.slane %v275_v63, 1  ;;  %v1878_v24 = vld [vmem:[%s2554_s1 + $0x10] ss:$0 sps:$4 sm:$0x33]   ;;  %v329_v54 = vrot.slane %v263_v45, 1 }
  0x30   : > { %1619 = vrot.lane.b32.xlu0 %v2051_v43, %s1927_s8  ;;  %1507 = vmatprep.subr.msk.bf16.mxu0 %vm988_vm2, %v1878_v24  ;;  %v990_v30 = vsel %vm988_vm2, %v1878_v24, 0  ;;  %v415_v63 = vrot.slane %v2226_v42, 2  ;;  %v416_v9 = vrot.slane %v2229_v44, 2  ;;  %v1773_v15 = vpack.i.bf16 %v2113_v16, %v2107_v13 }
  0x31   : > { %1508 = vmatprep.subr.msk.bf16.mxu1 %vm988_vm2, %v1878_v24  ;;  %1480 = vmatpush3.bf16.msra.mxu0 %v990_v30  ;;  %v330_v57 = vsel %vm300_vm1, %v327_v52, %v329_v54 }
  0x32   : > { %1504 = vmatpush3.bf16.msra.mxu1 %v990_v30  ;;  %1481 = vmatprep.subr.bf16.mxu0 %v1879_v18 }
  0x33   : > { %1634 = vrot.lane.b32.xlu1 %v2051_v43, %s1923_s30  ;;  %v2160_v43 = vld [vmem:[%s1993_s27 + $0xe0] sm:$0xff]  ;;  %1502 = vmatprep.subr.bf16.mxu1 %v1879_v18 }
  0x34   : > { %1629 = vrot.lane.b32.xlu0 %v2065_v49, %s1928_s9  ;;  %v687_v11 = vrot.slane %v2160_v43, 1  ;;  %v740_v12 = vrot.slane %v2160_v43, 2 }
  0x35   : > { %1482 = vmatpush3.bf16.msra.mxu0 %v1879_v18 }
  0x36   : > { %v2196_v25 = vsel %vm300_vm1, %v686_v3, %v687_v11  ;;  %v2199_v27 = vsel %vm389_vm0, %v739_v17, %v740_v12  ;;  %v2207_v35 = vsel %vm300_vm1, %v687_v11, %v689_v21  ;;  %v2212_v36 = vsel %vm389_vm0, %v740_v12, %v742_v28  ;;  %1505 = vmatpush3.bf16.msra.mxu1 %v1879_v18 }
  0x37   : > { %1644 = vrot.lane.b32.xlu1 %v2097_v7, %s1923_s30  ;;  %v1873_v22 = vpack.i.bf16 %v2212_v36, %v2199_v27  ;;  %1483 = vmatprep.subr.bf16.mxu0 %v1880_v48  ;;  %v417_v11 = vsel %vm389_vm0, %v415_v63, %v416_v9  ;;  %v1823_v3 = vpack.i.bf16 %v2145_v37, %v2138_v32 }
  0x38   : > { %1639 = vrot.lane.b32.xlu0 %v2128_v26, %s1928_s9  ;;  %1503 = vmatprep.subr.bf16.mxu1 %v1880_v48 }
  0x39   : > { %1484 = vmatpush3.bf16.msra.mxu0 %v1880_v48 }
  0x3a   : > { %1506 = vmatpush3.bf16.msra.mxu1 %v1880_v48 }
  0x3b   : > { %1654 = vrot.lane.b32.xlu1 %v2128_v26, %s1922_s29 }
  0x3c   : > { %1649 = vrot.lane.b32.xlu0 %v2065_v49, %s1922_s29  ;;  %v1863_v49 = vpack.i.bf16 %v2207_v35, %v2196_v25 }
  0x3f   : > { %1664 = vrot.lane.b32.xlu1 %v2103_v10, %s1921_s28 }
  0x40   : > { %1659 = vrot.lane.b32.xlu0 %v2074_v53, %s1921_s28  ;;  %v1683_v53 = vpack.i.bf16 %v414_v41, %v412_v40 }
  0x43   : > { %1674 = vrot.lane.b32.xlu1 %v1673_v38, %s1924_s5 }
  0x44   : > { %1669 = vrot.lane.b32.xlu0 %v2097_v7, %s1924_s5  ;;  %v328_v7 = vsel %vm300_vm1, %v326_v50, %v327_v52 }
  0x45   : > { %v1703_v60 = vpack.i.bf16 %v330_v57, %v328_v7 }
  0x47   : > { %1684 = vrot.lane.b32.xlu1 %v1683_v53, %s1925_s6 }
  0x48   : > { %1679 = vrot.lane.b32.xlu0 %v2128_v26, %s1925_s6  ;;  %v418_v26 = vrot.slane %v263_v45, 2 }
  0x4a   : > { %v419_v12 = vsel %vm389_vm0, %v416_v9, %v418_v26 }
  0x4b   : > { %1694 = vrot.lane.b32.xlu1 %v1693_v56, %s1926_s7  ;;  %v1718_v14 = vpack.i.bf16 %v419_v12, %v417_v11 }
  0x4c   : > { %1689 = vrot.lane.b32.xlu0 %v2103_v10, %s1926_s7  ;;  %v1743_v10 = vpack.i.bf16 %v2090_v62, %v2084_v59 }
  0x4f   : > { %1704 = vrot.lane.b32.xlu1 %v1703_v60, %s1927_s8 }
  0x50   : > { %1699 = vrot.lane.b32.xlu0 %v1673_v38, %s1927_s8 }
  0x53   : > { %1714 = vrot.lane.b32.xlu1 %v1673_v38, %s1923_s30 }
  0x54   : > { %1709 = vrot.lane.b32.xlu0 %v1683_v53, %s1928_s9 }
  0x57   : > { %1724 = vrot.lane.b32.xlu1 %v1703_v60, %s1923_s30 }
  0x58   : > { %1719 = vrot.lane.b32.xlu0 %v1718_v14, %s1928_s9 }
  0x5b   : > { %1734 = vrot.lane.b32.xlu1 %v1718_v14, %s1922_s29 }
  0x5c   : > { %1729 = vrot.lane.b32.xlu0 %v1683_v53, %s1922_s29 }
  0x5f   : > { %1744 = vrot.lane.b32.xlu1 %v1743_v10, %s1921_s28 }
  0x60   : > { %1739 = vrot.lane.b32.xlu0 %v1693_v56, %s1921_s28 }
  0x63   : > { %1754 = vrot.lane.b32.xlu1 %v2124_v23, %s1924_s5 }
  0x64   : > { %1749 = vrot.lane.b32.xlu0 %v1703_v60, %s1924_s5 }
  0x67   : > { %1764 = vrot.lane.b32.xlu1 %v2135_v31, %s1925_s6 }
  0x68   : > { %1759 = vrot.lane.b32.xlu0 %v1718_v14, %s1925_s6 }
  0x6b   : > { %1774 = vrot.lane.b32.xlu1 %v1773_v15, %s1926_s7 }
  0x6c   : > { %1769 = vrot.lane.b32.xlu0 %v1743_v10, %s1926_s7 }
  0x6f   : > { %1784 = vrot.lane.b32.xlu1 %v2152_v39, %s1927_s8 }
  0x70   : > { %1779 = vrot.lane.b32.xlu0 %v2124_v23, %s1927_s8 }
  0x73   : > { %1794 = vrot.lane.b32.xlu1 %v2124_v23, %s1923_s30  ;;  %v1853_v23 = vpack.i.bf16 %v2160_v43, %v2167_v55 }
  0x74   : > { %1789 = vrot.lane.b32.xlu0 %v2135_v31, %s1928_s9 }
  0x77   : > { %1804 = vrot.lane.b32.xlu1 %v2152_v39, %s1923_s30 }
  0x78   : > { %1799 = vrot.lane.b32.xlu0 %v2162_v51, %s1928_s9 }
  0x7b   : > { %1814 = vrot.lane.b32.xlu1 %v2162_v51, %s1922_s29 }
  0x7c   : > { %1809 = vrot.lane.b32.xlu0 %v2135_v31, %s1922_s29 }
  0x7f   : > { %1824 = vrot.lane.b32.xlu1 %v1823_v3, %s1921_s28 }
  0x80   : > { %1819 = vrot.lane.b32.xlu0 %v1773_v15, %s1921_s28  ;;  %s1370_s28 = sshll.u32 %s230_s25, 2 }
  0x83   : > { %1834 = vrot.lane.b32.xlu1 %v2176_v8, %s1924_s5 }
  0x84   : > { %1829 = vrot.lane.b32.xlu0 %v2152_v39, %s1924_s5  ;;  %s2509_s5 = scalar_lea.vmem %s2556_s3, %s1370_s28 }
  0x87   : > { %1844 = vrot.lane.b32.xlu1 %v2186_v20, %s1925_s6 }
  0x88   : > { %1839 = vrot.lane.b32.xlu0 %v2162_v51, %s1925_s6  ;;  %v1565_v31 = vpop.permute.xlu1 %1564  ;;  %s1371_s6 = sshll.u32 %s2569_s16, 1 }
  0x89   : > { %v1560_v32 = vpop.permute.xlu0 %1559  ;;  %v1566_v38 = vunpack.i.l.bf16 %v1565_v31 }
  0x8a   : > { %v1562_v40 = vunpack.i.h.bf16 %v1560_v32  ;;  %v1561_v41 = vunpack.i.l.bf16 %v1560_v32 }
  0x8b   : > { %1854 = vrot.lane.b32.xlu1 %v1853_v23, %s1926_s7 }
  0x8c   : > { %1849 = vrot.lane.b32.xlu0 %v1823_v3, %s1926_s7  ;;  %s239_s7 = sadd.s32 %s1371_s6, %s2573_s15 }
  0x8d   : > { %v1580_v37 = vpop.permute.xlu1 %1579 }
  0x8e   : > { %v1570_v17 = vpop.permute.xlu0 %1569  ;;  %v1582_v29 = vunpack.i.h.bf16 %v1580_v37  ;;  %v1581_v33 = vunpack.i.l.bf16 %v1580_v37 }
  0x8f   : > { %1864 = vrot.lane.b32.xlu1 %v1863_v49, %s1927_s8  ;;  %v1572_v19 = vunpack.i.h.bf16 %v1570_v17  ;;  %v1571_v21 = vunpack.i.l.bf16 %v1570_v17 }
  0x90   : > { %1859 = vrot.lane.b32.xlu0 %v2176_v8, %s1927_s8  ;;  %s1372_s8 = sshll.u32 %s239_s7, 1 }
  0x91   : > { %v1585_v39 = vpop.permute.xlu1 %1584  ;;  %v794_v27 = vsel %vm792_vm3, %v2015_v6, %v1572_v19  ;;  %s241_s11 = scalar_lea.vmem %s2557_s4, %s1372_s8 }
  0x92   : > { %v1575_v51 = vpop.permute.xlu0 %1574  ;;  %v1587_v34 = vunpack.i.h.bf16 %v1585_v39  ;;  %v1586_v35 = vunpack.i.l.bf16 %v1585_v39  ;;  %v811_v30 = vsel %vm809_vm4, %v794_v27, %v1582_v29 }
  0x93   : > { %1874 = vrot.lane.b32.xlu1 %v1873_v22, %s1928_s9  ;;  %v1577_v24 = vunpack.i.h.bf16 %v1575_v51  ;;  %v1576_v25 = vunpack.i.l.bf16 %v1575_v51  ;;  %v828_v50 = vsel %vm826_vm5, %v811_v30, %v1562_v40 }
  0x94   : > { %1869 = vrot.lane.b32.xlu0 %v2186_v20, %s1928_s9  ;;  %v793_v20 = vsel %vm792_vm3, %v2012_v5, %v1571_v21  ;;  %v1567_v5 = vunpack.i.h.bf16 %v1565_v31 }
  0x95   : > { %v2320_v43 = vpop.permute.xlu1 %1594  ;;  %v796_v49 = vsel %vm792_vm3, %v2009_v4, %v1577_v24  ;;  %v795_v36 = vsel %vm792_vm3, %v2002_v2, %v1576_v25  ;;  %v810_v6 = vsel %vm809_vm4, %v793_v20, %v1581_v33 }
  0x96   : > { %v1590_v55 = vpop.permute.xlu0 %1589  ;;  %v813_v45 = vsel %vm809_vm4, %v796_v49, %v1587_v34  ;;  %v812_v4 = vsel %vm809_vm4, %v795_v36, %v1586_v35  ;;  %v827_v53 = vsel %vm826_vm5, %v810_v6, %v1561_v41  ;;  %v1597_v57 = vunpack.i.h.bf16 %v2320_v43 }
  0x97   : > { %v1592_v48 = vunpack.i.h.bf16 %v1590_v55  ;;  %v1591_v2 = vunpack.i.l.bf16 %v1590_v55  ;;  %v1596_v60 = vunpack.i.l.bf16 %v2320_v43  ;;  %v829_v26 = vsel %vm826_vm5, %v812_v4, %v1566_v38 }
  0x98   : > { %v830_v11 = vsel %vm826_vm5, %v813_v45, %v1567_v5 }
  0x99   : > { %v2322_v28 = vpop.permute.xlu1 %1604  ;;  %v844_v10 = vsel %vm843_vm6, %v827_v53, %v1591_v2  ;;  %v845_v15 = vsel %vm843_vm6, %v828_v50, %v1592_v48  ;;  %v846_v29 = vsel %vm843_vm6, %v829_v26, %v1596_v60  ;;  %v847_v33 = vsel %vm843_vm6, %v830_v11, %v1597_v57 }
  0x9a   : > { %v1600_v8 = vpop.permute.xlu0 %1599  ;;  %v1607_v3 = vunpack.i.h.bf16 %v2322_v28  ;;  %v1606_v23 = vunpack.i.l.bf16 %v2322_v28 }
  0x9b   : > { %v1602_v52 = vunpack.i.h.bf16 %v1600_v8  ;;  %v1601_v54 = vunpack.i.l.bf16 %v1600_v8 }
  0x9c   : > { %v863_v34 = vsel %vm860_vm7, %v846_v29, %v1606_v23  ;;  %v864_v35 = vsel %vm860_vm7, %v847_v33, %v1607_v3 }
  0x9d   : > { %v1615_v18 = vpop.permute.xlu1 %1614  ;;  %v861_v31 = vsel %vm860_vm7, %v844_v10, %v1601_v54  ;;  %v862_v32 = vsel %vm860_vm7, %v845_v15, %v1602_v52 }
  0x9e   : > { %v1610_v22 = vpop.permute.xlu0 %1609  ;;  %v1617_v37 = vunpack.i.h.bf16 %v1615_v18  ;;  %v1616_v17 = vunpack.i.l.bf16 %v1615_v18 }
  0x9f   : > { %v1612_v63 = vunpack.i.h.bf16 %v1610_v22  ;;  %v1611_v9 = vunpack.i.l.bf16 %v1610_v22 }
  0xa0   : > { %v880_v22 = vsel %vm877_vm8, %v863_v34, %v1616_v17  ;;  %v881_v30 = vsel %vm877_vm8, %v864_v35, %v1617_v37 }
  0xa1   : > { %v1625_v56 = vpop.permute.xlu1 %1624  ;;  %v878_v43 = vsel %vm877_vm8, %v861_v31, %v1611_v9  ;;  %v879_v55 = vsel %vm877_vm8, %v862_v32, %v1612_v63 }
  0xa2   : > { %v1620_v7 = vpop.permute.xlu0 %1619  ;;  %v1627_v24 = vunpack.i.h.bf16 %v1625_v56  ;;  %v1626_v25 = vunpack.i.l.bf16 %v1625_v56 }
  0xa3   : > { %v1622_v12 = vunpack.i.h.bf16 %v1620_v7  ;;  %v1621_v14 = vunpack.i.l.bf16 %v1620_v7 }
  0xa4   : > { %v897_v38 = vsel %vm894_vm9, %v880_v22, %v1626_v25  ;;  %v898_v40 = vsel %vm894_vm9, %v881_v30, %v1627_v24 }
  0xa5   : > { %v1635_v39 = vpop.permute.xlu1 %1634  ;;  %v895_v8 = vsel %vm894_vm9, %v878_v43, %v1621_v14  ;;  %v896_v28 = vsel %vm894_vm9, %v879_v55, %v1622_v12 }
  0xa6   : > { %v1630_v51 = vpop.permute.xlu0 %1629  ;;  %v1637_v63 = vunpack.i.h.bf16 %v1635_v39  ;;  %v1636_v9 = vunpack.i.l.bf16 %v1635_v39 }
  0xa7   : > { %v1632_v19 = vunpack.i.h.bf16 %v1630_v51  ;;  %v1631_v21 = vunpack.i.l.bf16 %v1630_v51 }
  0xa8   : > { %v798_v51 = vsel %vm792_vm3, %v1999_v1, %v1637_v63  ;;  %v797_v39 = vsel %vm792_vm3, %v1996_v0, %v1636_v9 }
  0xa9   : > { %v912_v27 = vsel %vm911_vm10, %v895_v8, %v1631_v21  ;;  %v913_v20 = vsel %vm911_vm10, %v896_v28, %v1632_v19  ;;  %v1645_v49 = vpop.permute.xlu1 %1644 }
  0xaa   : > { %v1640_v36 = vpop.permute.xlu0 %1639  ;;  %v928_v18 = vpack.c.bf16 %v913_v20, %v912_v27  ;;  %v1647_v57 = vunpack.i.h.bf16 %v1645_v49  ;;  %v1646_v60 = vunpack.i.l.bf16 %v1645_v49 }
  0xab   : > { %v1642_v6 = vunpack.i.h.bf16 %v1640_v36  ;;  %v1641_v5 = vunpack.i.l.bf16 %v1640_v36 }
  0xac   : > { %1485 = vmatprep.mubr.msk.bf16.mxu0 %vm963_vm11, %v928_v18  ;;  %v800_v31 = vsel %vm792_vm3, %v2059_v47, %v1647_v57  ;;  %v799_v32 = vsel %vm792_vm3, %v2056_v46, %v1646_v60 }
  0xad   : > { %v914_v41 = vsel %vm911_vm10, %v897_v38, %v1641_v5  ;;  %v915_v45 = vsel %vm911_vm10, %v898_v40, %v1642_v6  ;;  %v1655_v48 = vpop.permute.xlu1 %1654 }
  0xae   : > { %v929_v4 = vpack.c.bf16 %v915_v45, %v914_v41  ;;  %v1650_v2 = vpop.permute.xlu0 %1649  ;;  %v1657_v26 = vunpack.i.h.bf16 %v1655_v48  ;;  %v1656_v11 = vunpack.i.l.bf16 %v1655_v48 }
  0xaf   : > { %v1652_v12 = vunpack.i.h.bf16 %v1650_v2  ;;  %v1651_v14 = vunpack.i.l.bf16 %v1650_v2 }
  0xb0   : > { %1486 = vmatmul.mubr.msk.bf16.vlgmr.msra.gmra.mxu0 %vm963_vm11, %v929_v4  ;;  %v816_v43 = vsel %vm809_vm4, %v799_v32, %v1656_v11  ;;  %v817_v55 = vsel %vm809_vm4, %v800_v31, %v1657_v26 }
  0xb1   : > { %v1665_v53 = vpop.permute.xlu1 %1664  ;;  %v815_v19 = vsel %vm809_vm4, %v798_v51, %v1652_v12  ;;  %v814_v21 = vsel %vm809_vm4, %v797_v39, %v1651_v14 }
  0xb2   : > { %v1660_v50 = vpop.permute.xlu0 %1659  ;;  %v1667_v10 = vunpack.i.h.bf16 %v1665_v53  ;;  %v1666_v15 = vunpack.i.l.bf16 %v1665_v53 }
  0xb3   : > { %v1662_v37 = vunpack.i.h.bf16 %v1660_v50  ;;  %v1661_v17 = vunpack.i.l.bf16 %v1660_v50 }
  0xb4   : > { %v833_v46 = vsel %vm826_vm5, %v816_v43, %v1666_v15  ;;  %v834_v25 = vsel %vm826_vm5, %v817_v55, %v1667_v10 }
  0xb5   : > { %v2366_v52 = vpop.permute.xlu1 %1674  ;;  %v831_v0 = vsel %vm826_vm5, %v814_v21, %v1661_v17  ;;  %v832_v33 = vsel %vm826_vm5, %v815_v19, %v1662_v37 }
  0xb6   : > { %v1670_v54 = vpop.permute.xlu0 %1669  ;;  %v1677_v34 = vunpack.i.h.bf16 %v2366_v52  ;;  %v1676_v35 = vunpack.i.l.bf16 %v2366_v52 }
  0xb7   : > { %v1672_v47 = vunpack.i.h.bf16 %v1670_v54  ;;  %v1671_v24 = vunpack.i.l.bf16 %v1670_v54 }
  0xb8   : > { %v850_v57 = vsel %vm843_vm6, %v833_v46, %v1676_v35  ;;  %v851_v60 = vsel %vm843_vm6, %v834_v25, %v1677_v34 }
  0xb9   : > { %v2368_v56 = vpop.permute.xlu1 %1684  ;;  %v848_v18 = vsel %vm843_vm6, %v831_v0, %v1671_v24  ;;  %v849_v22 = vsel %vm843_vm6, %v832_v33, %v1672_v47 }
  0xba   : > { %v1680_v7 = vpop.permute.xlu0 %1679  ;;  %v1687_v30 = vunpack.i.h.bf16 %v2368_v56  ;;  %v1686_v6 = vunpack.i.l.bf16 %v2368_v56 }
  0xbb   : > { %v1682_v8 = vunpack.i.h.bf16 %v1680_v7  ;;  %v1681_v28 = vunpack.i.l.bf16 %v1680_v7 }
  0xbc   : > { %v867_v26 = vsel %vm860_vm7, %v850_v57, %v1686_v6  ;;  %v868_v11 = vsel %vm860_vm7, %v851_v60, %v1687_v30 }
  0xbd   : > { %v1695_v3 = vpop.permute.xlu1 %1694  ;;  %v865_v5 = vsel %vm860_vm7, %v848_v18, %v1681_v28  ;;  %v866_v38 = vsel %vm860_vm7, %v849_v22, %v1682_v8 }
  0xbe   : > { %v1690_v23 = vpop.permute.xlu0 %1689  ;;  %v1697_v40 = vunpack.i.h.bf16 %v1695_v3  ;;  %v1696_v41 = vunpack.i.l.bf16 %v1695_v3 }
  0xbf   : > { %v1692_v27 = vunpack.i.h.bf16 %v1690_v23  ;;  %v1691_v20 = vunpack.i.l.bf16 %v1690_v23 }
  0xc0   : > { %v884_v15 = vsel %vm877_vm8, %v867_v26, %v1696_v41  ;;  %v885_v3 = vsel %vm877_vm8, %v868_v11, %v1697_v40 }
  0xc1   : > { %v1705_v1 = vpop.permute.xlu1 %1704  ;;  %v882_v48 = vsel %vm877_vm8, %v865_v5, %v1691_v20  ;;  %v883_v2 = vsel %vm877_vm8, %v866_v38, %v1692_v27 }
  0xc2   : > { %v1700_v29 = vpop.permute.xlu0 %1699  ;;  %v1707_v52 = vunpack.i.h.bf16 %v1705_v1  ;;  %v1706_v54 = vunpack.i.l.bf16 %v1705_v1 }
  0xc3   : > { %v1702_v49 = vunpack.i.h.bf16 %v1700_v29  ;;  %v1701_v36 = vunpack.i.l.bf16 %v1700_v29 }
  0xc4   : > { %v901_v32 = vsel %vm894_vm9, %v884_v15, %v1706_v54  ;;  %v902_v37 = vsel %vm894_vm9, %v885_v3, %v1707_v52 }
  0xc5   : > { %v1715_v45 = vpop.permute.xlu1 %1714  ;;  %v899_v7 = vsel %vm894_vm9, %v882_v48, %v1701_v36  ;;  %v900_v56 = vsel %vm894_vm9, %v883_v2, %v1702_v49 }
  0xc6   : > { %v1710_v4 = vpop.permute.xlu0 %1709  ;;  %v1717_v1 = vunpack.i.h.bf16 %v1715_v45  ;;  %v1716_v29 = vunpack.i.l.bf16 %v1715_v45 }
  0xc7   : > { %v1712_v53 = vunpack.i.h.bf16 %v1710_v4  ;;  %v1711_v50 = vunpack.i.l.bf16 %v1710_v4 }
  0xc8   : > { %v802_v5 = vsel %vm792_vm3, %v2087_v61, %v1717_v1  ;;  %v801_v38 = vsel %vm792_vm3, %v2081_v58, %v1716_v29 }
  0xc9   : > { %v916_v63 = vsel %vm911_vm10, %v899_v7, %v1711_v50  ;;  %v917_v9 = vsel %vm911_vm10, %v900_v56, %v1712_v53  ;;  %v1725_v14 = vpop.permute.xlu1 %1724 }
  0xca   : > { %v930_v12 = vpack.c.bf16 %v917_v9, %v916_v63  ;;  %v1720_v10 = vpop.permute.xlu0 %1719  ;;  %v1727_v8 = vunpack.i.h.bf16 %v1725_v14  ;;  %v1726_v28 = vunpack.i.l.bf16 %v1725_v14 }
  0xcb   : > { %v1722_v23 = vunpack.i.h.bf16 %v1720_v10  ;;  %v1721_v31 = vunpack.i.l.bf16 %v1720_v10 }
  0xcc   : > { %1489 = vmatprep.mubr.msk.bf16.mxu0 %vm963_vm11, %v930_v12  ;;  %v804_v18 = vsel %vm792_vm3, %v2229_v44, %v1727_v8  ;;  %v803_v22 = vsel %vm792_vm3, %v2226_v42, %v1726_v28 }
  0xcd   : > { %v919_v17 = vsel %vm911_vm10, %v902_v37, %v1722_v23  ;;  %v918_v51 = vsel %vm911_vm10, %v901_v32, %v1721_v31  ;;  %v1735_v43 = vpop.permute.xlu1 %1734 }
  0xce   : > { %v931_v39 = vpack.c.bf16 %v919_v17, %v918_v51  ;;  %v1730_v55 = vpop.permute.xlu0 %1729  ;;  %v1737_v0 = vunpack.i.h.bf16 %v1735_v43  ;;  %v1736_v33 = vunpack.i.l.bf16 %v1735_v43 }
  0xcf   : > { %v1732_v27 = vunpack.i.h.bf16 %v1730_v55  ;;  %v1731_v20 = vunpack.i.l.bf16 %v1730_v55 }
  0xd0   : > { %1490 = vmatmul.mubr.msk.bf16.gmra.mxu0 %vm963_vm11, %v931_v39  ;;  %v820_v40 = vsel %vm809_vm4, %v803_v22, %v1736_v33  ;;  %v821_v41 = vsel %vm809_vm4, %v804_v18, %v1737_v0 }
  0xd1   : > { %v1745_v19 = vpop.permute.xlu1 %1744  ;;  %v819_v45 = vsel %vm809_vm4, %v802_v5, %v1732_v27  ;;  %v818_v4 = vsel %vm809_vm4, %v801_v38, %v1731_v20 }
  0xd2   : > { %v1740_v21 = vpop.permute.xlu0 %1739  ;;  %v1747_v34 = vunpack.i.h.bf16 %v1745_v19  ;;  %v1746_v35 = vunpack.i.l.bf16 %v1745_v19 }
  0xd3   : > { %v1742_v30 = vunpack.i.h.bf16 %v1740_v21  ;;  %v1741_v6 = vunpack.i.l.bf16 %v1740_v21 }
  0xd4   : > { %v837_v42 = vsel %vm826_vm5, %v820_v40, %v1746_v35  ;;  %v838_v2 = vsel %vm826_vm5, %v821_v41, %v1747_v34 }
  0xd5   : > { %v2412_v47 = vpop.permute.xlu1 %1754  ;;  %v835_v58 = vsel %vm826_vm5, %v818_v4, %v1741_v6  ;;  %v836_v54 = vsel %vm826_vm5, %v819_v45, %v1742_v30 }
  0xd6   : > { %v1750_v24 = vpop.permute.xlu0 %1749  ;;  %v1757_v57 = vunpack.i.h.bf16 %v2412_v47  ;;  %v1756_v60 = vunpack.i.l.bf16 %v2412_v47 }
  0xd7   : > { %v1752_v44 = vunpack.i.h.bf16 %v1750_v24  ;;  %v1751_v48 = vunpack.i.l.bf16 %v1750_v24 }
  0xd8   : > { %v854_v47 = vsel %vm843_vm6, %v837_v42, %v1756_v60  ;;  %v855_v24 = vsel %vm843_vm6, %v838_v2, %v1757_v57 }
  0xd9   : > { %v2414_v46 = vpop.permute.xlu1 %1764  ;;  %v852_v26 = vsel %vm843_vm6, %v835_v58, %v1751_v48  ;;  %v853_v11 = vsel %vm843_vm6, %v836_v54, %v1752_v44 }
  0xda   : > { %v1760_v25 = vpop.permute.xlu0 %1759  ;;  %v1767_v12 = vunpack.i.h.bf16 %v2414_v46  ;;  %v1766_v14 = vunpack.i.l.bf16 %v2414_v46 }
  0xdb   : > { %v1762_v53 = vunpack.i.h.bf16 %v1760_v25  ;;  %v1761_v50 = vunpack.i.l.bf16 %v1760_v25 }
  0xdc   : > { %v871_v8 = vsel %vm860_vm7, %v854_v47, %v1766_v14  ;;  %v872_v28 = vsel %vm860_vm7, %v855_v24, %v1767_v12 }
  0xdd   : > { %v1775_v49 = vpop.permute.xlu1 %1774  ;;  %v869_v10 = vsel %vm860_vm7, %v852_v26, %v1761_v50  ;;  %v870_v15 = vsel %vm860_vm7, %v853_v11, %v1762_v53 }
  0xde   : > { %v1770_v36 = vpop.permute.xlu0 %1769  ;;  %v1777_v3 = vunpack.i.h.bf16 %v1775_v49  ;;  %v1776_v23 = vunpack.i.l.bf16 %v1775_v49 }
  0xdf   : > { %v1772_v7 = vunpack.i.h.bf16 %v1770_v36  ;;  %v1771_v56 = vunpack.i.l.bf16 %v1770_v36 }
  0xe0   : > { %v888_v33 = vsel %vm877_vm8, %v871_v8, %v1776_v23  ;;  %v889_v27 = vsel %vm877_vm8, %v872_v28, %v1777_v3 }
  0xe1   : > { %v1785_v61 = vpop.permute.xlu1 %1784  ;;  %v886_v37 = vsel %vm877_vm8, %v869_v10, %v1771_v56  ;;  %v887_v17 = vsel %vm877_vm8, %v870_v15, %v1772_v7 }
  0xe2   : > { %v1780_v52 = vpop.permute.xlu0 %1779  ;;  %v1787_v43 = vunpack.i.h.bf16 %v1785_v61  ;;  %v1786_v55 = vunpack.i.l.bf16 %v1785_v61 }
  0xe3   : > { %v1782_v63 = vunpack.i.h.bf16 %v1780_v52  ;;  %v1781_v9 = vunpack.i.l.bf16 %v1780_v52 }
  0xe4   : > { %v905_v35 = vsel %vm894_vm9, %v888_v33, %v1786_v55  ;;  %v906_v49 = vsel %vm894_vm9, %v889_v27, %v1787_v43 }
  0xe5   : > { %v1795_v31 = vpop.permute.xlu1 %1794  ;;  %v903_v19 = vsel %vm894_vm9, %v886_v37, %v1781_v9  ;;  %v904_v21 = vsel %vm894_vm9, %v887_v17, %v1782_v63 }
  0xe6   : > { %v1790_v32 = vpop.permute.xlu0 %1789  ;;  %v1797_v45 = vunpack.i.h.bf16 %v1795_v31  ;;  %v1796_v4 = vunpack.i.l.bf16 %v1795_v31 }
  0xe7   : > { %v1792_v51 = vunpack.i.h.bf16 %v1790_v32  ;;  %v1791_v39 = vunpack.i.l.bf16 %v1790_v32 }
  0xe8   : > { %v806_v57 = vsel %vm792_vm3, %v2090_v62, %v1797_v45  ;;  %v805_v60 = vsel %vm792_vm3, %v2084_v59, %v1796_v4 }
  0xe9   : > { %v920_v46 = vsel %vm911_vm10, %v903_v19, %v1791_v39  ;;  %v921_v25 = vsel %vm911_vm10, %v904_v21, %v1792_v51  ;;  %v1805_v1 = vpop.permute.xlu1 %1804 }
  0xea   : > { %v1800_v29 = vpop.permute.xlu0 %1799  ;;  %v932_v0 = vpack.c.bf16 %v921_v25, %v920_v46  ;;  %v1807_v44 = vunpack.i.h.bf16 %v1805_v1  ;;  %v1806_v48 = vunpack.i.l.bf16 %v1805_v1 }
  0xeb   : > { %v1802_v20 = vunpack.i.h.bf16 %v1800_v29  ;;  %v1801_v34 = vunpack.i.l.bf16 %v1800_v29 }
  0xec   : > { %1493 = vmatprep.mubr.msk.bf16.mxu1 %vm963_vm11, %v932_v0  ;;  %v808_v63 = vsel %vm792_vm3, %v2113_v16, %v1807_v44  ;;  %v807_v9 = vsel %vm792_vm3, %v2107_v13, %v1806_v48 }
  0xed   : > { %v923_v36 = vsel %vm911_vm10, %v906_v49, %v1802_v20  ;;  %v922_v18 = vsel %vm911_vm10, %v905_v35, %v1801_v34  ;;  %v1815_v30 = vpop.permute.xlu1 %1814 }
  0xee   : > { %v933_v22 = vpack.c.bf16 %v923_v36, %v922_v18  ;;  %v1810_v6 = vpop.permute.xlu0 %1809  ;;  %v1817_v42 = vunpack.i.h.bf16 %v1815_v30  ;;  %v1816_v2 = vunpack.i.l.bf16 %v1815_v30 }
  0xef   : > { %v1812_v53 = vunpack.i.h.bf16 %v1810_v6  ;;  %v1811_v50 = vunpack.i.l.bf16 %v1810_v6 }
  0xf0   : > { %1494 = vmatmul.mubr.msk.bf16.vlgmr.msra.gmra.mxu1 %vm963_vm11, %v933_v22  ;;  %v824_v26 = vsel %vm809_vm4, %v807_v9, %v1816_v2  ;;  %v825_v11 = vsel %vm809_vm4, %v808_v63, %v1817_v42 }
  0xf1   : > { %v1825_v5 = vpop.permute.xlu1 %1824  ;;  %v823_v12 = vsel %vm809_vm4, %v806_v57, %v1812_v53  ;;  %v822_v14 = vsel %vm809_vm4, %v805_v60, %v1811_v50 }
  0xf2   : > { %v1820_v38 = vpop.permute.xlu0 %1819  ;;  %v1827_v58 = vunpack.i.h.bf16 %v1825_v5  ;;  %v1826_v54 = vunpack.i.l.bf16 %v1825_v5 }
  0xf3   : > { %v1822_v7 = vunpack.i.h.bf16 %v1820_v38  ;;  %v1821_v56 = vunpack.i.l.bf16 %v1820_v38 }
  0xf4   : > { %v841_v31 = vsel %vm826_vm5, %v824_v26, %v1826_v54  ;;  %v842_v16 = vsel %vm826_vm5, %v825_v11, %v1827_v58  ;;  %v2501_v54 = vld [vmem:[%s2555_s2] ss:$0 sm:$0xff] }
  0xf5   : > { %v1835_v40 = vpop.permute.xlu1 %1834  ;;  %v839_v13 = vsel %vm826_vm5, %v822_v14, %v1821_v56  ;;  %v840_v32 = vsel %vm826_vm5, %v823_v12, %v1822_v7 }
  0xf6   : > { %v1830_v41 = vpop.permute.xlu0 %1829  ;;  %v1837_v62 = vunpack.i.h.bf16 %v1835_v40  ;;  %v1836_v3 = vunpack.i.l.bf16 %v1835_v40 }
  0xf7   : > { %v1832_v23 = vunpack.i.h.bf16 %v1830_v41  ;;  %v1831_v59 = vunpack.i.l.bf16 %v1830_v41 }
  0xf8   : > { %v858_v46 = vsel %vm843_vm6, %v841_v31, %v1836_v3  ;;  %v859_v25 = vsel %vm843_vm6, %v842_v16, %v1837_v62 }
  0xf9   : > { %v1845_v61 = vpop.permute.xlu1 %1844  ;;  %v856_v8 = vsel %vm843_vm6, %v839_v13, %v1831_v59  ;;  %v857_v28 = vsel %vm843_vm6, %v840_v32, %v1832_v23 }
  0xfa   : > { %v1840_v52 = vpop.permute.xlu0 %1839  ;;  %v1847_v37 = vunpack.i.h.bf16 %v1845_v61  ;;  %v1846_v17 = vunpack.i.l.bf16 %v1845_v61 }
  0xfb   : > { %v1842_v51 = vunpack.i.h.bf16 %v1840_v52  ;;  %v1841_v39 = vunpack.i.l.bf16 %v1840_v52 }
  0xfc   : > { %v875_v27 = vsel %vm860_vm7, %v858_v46, %v1846_v17  ;;  %v876_v20 = vsel %vm860_vm7, %v859_v25, %v1847_v37 }
  0xfd   : > { %v1855_v10 = vpop.permute.xlu1 %1854  ;;  %v873_v34 = vsel %vm860_vm7, %v856_v8, %v1841_v39  ;;  %v874_v35 = vsel %vm860_vm7, %v857_v28, %v1842_v51 }
  0xfe   : > { %v1850_v15 = vpop.permute.xlu0 %1849  ;;  %v1857_v43 = vunpack.i.h.bf16 %v1855_v10  ;;  %v1856_v55 = vunpack.i.l.bf16 %v1855_v10 }
  0xff   : > { %v1852_v19 = vunpack.i.h.bf16 %v1850_v15  ;;  %v1851_v21 = vunpack.i.l.bf16 %v1850_v15 }
 0x100   : > { %v892_v49 = vsel %vm877_vm8, %v875_v27, %v1856_v55  ;;  %v893_v36 = vsel %vm877_vm8, %v876_v20, %v1857_v43 }
 0x101   : > { %v1865_v47 = vpop.permute.xlu1 %1864  ;;  %v890_v18 = vsel %vm877_vm8, %v873_v34, %v1851_v21  ;;  %v891_v22 = vsel %vm877_vm8, %v874_v35, %v1852_v19 }
 0x102   : > { %v1860_v24 = vpop.permute.xlu0 %1859  ;;  %v1867_v1 = vunpack.i.h.bf16 %v1865_v47  ;;  %v1866_v29 = vunpack.i.l.bf16 %v1865_v47 }
 0x103   : > { %v1862_v0 = vunpack.i.h.bf16 %v1860_v24  ;;  %v1861_v33 = vunpack.i.l.bf16 %v1860_v24 }
 0x104   : > { %v909_v45 = vsel %vm894_vm9, %v892_v49, %v1866_v29  ;;  %v910_v4 = vsel %vm894_vm9, %v893_v36, %v1867_v1 }
 0x105   : > { %v1875_v30 = vpop.permute.xlu1 %1874  ;;  %v907_v44 = vsel %vm894_vm9, %v890_v18, %v1861_v33  ;;  %v908_v48 = vsel %vm894_vm9, %v891_v22, %v1862_v0 }
 0x106   : > { %v1870_v6 = vpop.permute.xlu0 %1869  ;;  %v1877_v5 = vunpack.i.h.bf16 %v1875_v30  ;;  %v1876_v38 = vunpack.i.l.bf16 %v1875_v30 }
 0x107   : > { %v1872_v40 = vunpack.i.h.bf16 %v1870_v6  ;;  %v1871_v41 = vunpack.i.l.bf16 %v1870_v6 }
 0x108   : > { %v926_v42 = vsel %vm911_vm10, %v909_v45, %v1876_v38  ;;  %v927_v2 = vsel %vm911_vm10, %v910_v4, %v1877_v5 }
 0x109   : > { %v924_v53 = vsel %vm911_vm10, %v907_v44, %v1871_v41  ;;  %v925_v50 = vsel %vm911_vm10, %v908_v48, %v1872_v40  ;;  %v935_v61 = vpack.c.bf16 %v927_v2, %v926_v42 }
 0x10a   : > { %v934_v52 = vpack.c.bf16 %v925_v50, %v924_v53 }
 0x10c   : > { %1497 = vmatprep.mubr.msk.bf16.mxu1 %vm963_vm11, %v934_v52 }
 0x10d   : > { %1498 = vmatmul.mubr.msk.bf16.gmra.mxu1 %vm963_vm11, %v935_v61 }
 0x170   : > { %v1487_v58 = vpop.f32.mrf.mxu0 }
 0x171   : > { %v1035_v57 = vadd.f32 %v1487_v58, %v2501_v54 }
 0x172   : > { %v1026_v7 = vpop.f32.mrf.mxu0 }
 0x173   : > { %v1027_v60 = vadd.f32 %v2501_v54, %v1026_v7  ;;  %v1193_v62 = vmul.f32 %v1035_v57, %v1035_v57 }
 0x174   : > { %v1488_v56 = vpop.f32.mrf.mxu0 }
 0x175   : > { %v1038_v63 = vadd.f32 %v1488_v56, %v2501_v54  ;;  %v1191_v12 = vmul.f32 %v1027_v60, %v1027_v60 }
 0x176   : > { %v1029_v9 = vpop.f32.mrf.mxu0 }
 0x177   : > { %v1429_v26 = vpack.c.bf16 %v1038_v63, %v1035_v57  ;;  %v1030_v11 = vadd.f32 %v2501_v54, %v1029_v9  ;;  %v1194_v59 = vmul.f32 %v1038_v63, %v1038_v63 }
 0x179   : > { %1461 = vst [vmem:[%s2509_s5 + $0x8] sm:$0xff] %v1429_v26   ;;  %v1424_v14 = vpack.c.bf16 %v1030_v11, %v1027_v60  ;;  %v1169_v10 = vadd.f32 %v1030_v11, %v1027_v60  ;;  %v1192_v15 = vmul.f32 %v1030_v11, %v1030_v11 }
 0x17b   : > { %1425 = vst [vmem:[%s2509_s5] sm:$0xff] %v1424_v14   ;;  %v1170_v3 = vadd.f32 %v1169_v10, %v1035_v57  ;;  %v1207_v23 = vadd.f32 %v1192_v15, %v1191_v12 }
 0x17d   : > { %v1208_v31 = vadd.f32 %v1207_v23, %v1193_v62  ;;  %v1171_v16 = vadd.f32 %v1170_v3, %v1038_v63 }
 0x17f   : > { %v1209_v13 = vadd.f32 %v1208_v31, %v1194_v59 }
 0x190   : > { %v1491_v32 = vpop.f32.mrf.mxu0 }
 0x191   : > { %v1051_v51 = vadd.f32 %v1491_v32, %v2501_v54 }
 0x192   : > { %v1042_v37 = vpop.f32.mrf.mxu0 }
 0x193   : > { %v1043_v55 = vadd.f32 %v2501_v54, %v1042_v37  ;;  %v1197_v22 = vmul.f32 %v1051_v51, %v1051_v51 }
 0x194   : > { %v1492_v17 = vpop.f32.mrf.mxu0 }
 0x195   : > { %v1054_v39 = vadd.f32 %v1492_v17, %v2501_v54  ;;  %v1195_v20 = vmul.f32 %v1043_v55, %v1043_v55  ;;  %v1172_v34 = vadd.f32 %v1171_v16, %v1043_v55 }
 0x196   : > { %v1045_v43 = vpop.f32.mrf.mxu0 }
 0x197   : > { %v1439_v19 = vpack.c.bf16 %v1054_v39, %v1051_v51  ;;  %v1046_v21 = vadd.f32 %v2501_v54, %v1045_v43  ;;  %v1210_v49 = vadd.f32 %v1209_v13, %v1195_v20  ;;  %v1198_v5 = vmul.f32 %v1054_v39, %v1054_v39 }
 0x199   : > { %1463 = vst [vmem:[%s2509_s5 + $0x18] sm:$0xff] %v1439_v19   ;;  %v1434_v47 = vpack.c.bf16 %v1046_v21, %v1043_v55  ;;  %v1196_v35 = vmul.f32 %v1046_v21, %v1046_v21  ;;  %v1173_v36 = vadd.f32 %v1172_v34, %v1046_v21 }
 0x19b   : > { %1462 = vst [vmem:[%s2509_s5 + $0x10] sm:$0xff] %v1434_v47   ;;  %v1211_v18 = vadd.f32 %v1210_v49, %v1196_v35  ;;  %v1174_v30 = vadd.f32 %v1173_v36, %v1051_v51 }
 0x19d   : > { %v1212_v6 = vadd.f32 %v1211_v18, %v1197_v22  ;;  %v1175_v38 = vadd.f32 %v1174_v30, %v1054_v39 }
 0x19f   : > { %v1213_v45 = vadd.f32 %v1212_v6, %v1198_v5 }
 0x1b0   : > { %v1495_v24 = vpop.f32.mrf.mxu1 }
 0x1b1   : > { %v1067_v8 = vadd.f32 %v1495_v24, %v2501_v54 }
 0x1b2   : > { %v1058_v46 = vpop.f32.mrf.mxu1 }
 0x1b3   : > { %v1059_v29 = vadd.f32 %v2501_v54, %v1058_v46  ;;  %v1201_v53 = vmul.f32 %v1067_v8, %v1067_v8 }
 0x1b4   : > { %v1496_v25 = vpop.f32.mrf.mxu1 }
 0x1b5   : > { %v1070_v28 = vadd.f32 %v1496_v25, %v2501_v54  ;;  %v1199_v40 = vmul.f32 %v1059_v29, %v1059_v29  ;;  %v1176_v41 = vadd.f32 %v1175_v38, %v1059_v29 }
 0x1b6   : > { %v1061_v1 = vpop.f32.mrf.mxu1 }
 0x1b7   : > { %v1449_v0 = vpack.c.bf16 %v1070_v28, %v1067_v8  ;;  %v1062_v33 = vadd.f32 %v2501_v54, %v1061_v1  ;;  %v1214_v44 = vadd.f32 %v1213_v45, %v1199_v40  ;;  %v1202_v7 = vmul.f32 %v1070_v28, %v1070_v28 }
 0x1b9   : > { %1465 = vst [vmem:[%s2509_s5 + $0x28] sm:$0xff] %v1449_v0   ;;  %v1444_v27 = vpack.c.bf16 %v1062_v33, %v1059_v29  ;;  %v1200_v4 = vmul.f32 %v1062_v33, %v1062_v33  ;;  %v1177_v48 = vadd.f32 %v1176_v41, %v1062_v33 }
 0x1bb   : > { %1464 = vst [vmem:[%s2509_s5 + $0x20] sm:$0xff] %v1444_v27   ;;  %v1215_v42 = vadd.f32 %v1214_v44, %v1200_v4  ;;  %v1178_v50 = vadd.f32 %v1177_v48, %v1067_v8 }
 0x1bd   : > { %v1216_v52 = vadd.f32 %v1215_v42, %v1201_v53  ;;  %v1179_v60 = vadd.f32 %v1178_v50, %v1070_v28 }
 0x1bf   : > { %v1217_v12 = vadd.f32 %v1216_v52, %v1202_v7 }
 0x1cd   : > { %v1499_v2 = vpop.f32.mrf.mxu1 }
 0x1ce   : > { %v1083_v57 = vadd.f32 %v1499_v2, %v2501_v54 }
 0x1cf   : > { %v1074_v61 = vpop.f32.mrf.mxu1 }
 0x1d0   : > { %v1075_v58 = vadd.f32 %v2501_v54, %v1074_v61  ;;  %v1205_v59 = vmul.f32 %v1083_v57, %v1083_v57 }
 0x1d1   : > { %v1500_v56 = vpop.f32.mrf.mxu1 }
 0x1d2   : > { %v1203_v63 = vmul.f32 %v1075_v58, %v1075_v58  ;;  %v1086_v9 = vadd.f32 %v1500_v56, %v2501_v54  ;;  %v1180_v11 = vadd.f32 %v1179_v60, %v1075_v58 }
 0x1d3   : > { %v1077_v26 = vpop.f32.mrf.mxu1 }
 0x1d4   : > { %v1459_v14 = vpack.c.bf16 %v1086_v9, %v1083_v57  ;;  %v1078_v10 = vadd.f32 %v2501_v54, %v1077_v26  ;;  %v1218_v15 = vadd.f32 %v1217_v12, %v1203_v63  ;;  %v1206_v13 = vmul.f32 %v1086_v9, %v1086_v9 }
 0x1d6   : > { %1467 = vst [vmem:[%s2509_s5 + $0x38] sm:$0xff] %v1459_v14   ;;  %v1454_v62 = vpack.c.bf16 %v1078_v10, %v1075_v58  ;;  %v1181_v3 = vadd.f32 %v1180_v11, %v1078_v10  ;;  %v1204_v23 = vmul.f32 %v1078_v10, %v1078_v10 }
 0x1d8   : > { %1466 = vst [vmem:[%s2509_s5 + $0x30] sm:$0xff] %v1454_v62   ;;  %v1182_v31 = vadd.f32 %v1181_v3, %v1083_v57  ;;  %v1219_v16 = vadd.f32 %v1218_v15, %v1204_v23 }
 0x1da   : > { %v1183_v32 = vadd.f32 %v1182_v31, %v1086_v9  ;;  %v1220_v37 = vadd.f32 %v1219_v16, %v1205_v59 }
 0x1dc   : > { %v1184_v17 = vrot.slane %v1183_v32, 4  ;;  %v1221_v51 = vadd.f32 %v1220_v37, %v1206_v13 }
 0x1de   : > { %v1185_v39 = vadd.f32 %v1184_v17, %v1183_v32  ;;  %v1222_v43 = vrot.slane %v1221_v51, 4 }
 0x1e0   : > { %v1186_v54 = vrot.slane %v1185_v39, 2  ;;  %v1223_v55 = vadd.f32 %v1222_v43, %v1221_v51 }
 0x1e2   : > { %v1187_v19 = vadd.f32 %v1186_v54, %v1185_v39  ;;  %v1224_v21 = vrot.slane %v1223_v55, 2 }
 0x1e4   : > { %v1188_v47 = vrot.slane %v1187_v19, 1  ;;  %v1225_v24 = vadd.f32 %v1224_v21, %v1223_v55 }
 0x1e6   : > { %v1189_v46 = vadd.f32 %v1188_v47, %v1187_v19  ;;  %v1226_v25 = vrot.slane %v1225_v24, 1 }
 0x1e8   : > { %1190 = vst [vmem:[%s241_s11] sm:$0x1] %v1189_v46  ;;  %v1227_v8 = vadd.f32 %v1226_v25, %v1225_v24 }
 0x1ea   : > { %1228 = vst [vmem:[%s241_s11 + $0x1] sm:$0x1] %v1227_v8 }
 0x1eb PF: > { %s15_s19 = sadd.s32 1, %s1919_s19   ;;  %s2558_s15 = smov %s1911_s17 }
 0x1ec   : > { %p12_p8 = scmp.ge.s32.totalorder %s15_s19, 6   ;;  %s2559_s16 = smov %s1915_s18 }
 0x1ed   : > { %s2560_s17 = smov %s2563_s20  ;;  %s2561_s18 = smov %s2567_s21 }
 0x1ee   :  { %14 = sbr.rel (!%p12_p8) target bundleno = 3 (0x3), region = 75 }

// kernel: deconv_layer_split_forward.3
= control target key start
LH: loop header
LB: loop body
LE: loop exit
PB: predicated region body
PF: predicated region fallthrough
CT: control target
= control target key end

     0   :  { %v732_v48 = vlaneseq  ;;  %s2180_s0 = inlined_call_operand.vmem [shape: bf16[512,128], index: 0, kind: input, shape index: {}]   ;;  %s2181_s1 = inlined_call_operand.vmem [shape: f32[1,128], index: 1, kind: input, shape index: {}]   ;;  %s2182_s2 = inlined_call_operand.vmem [shape: f32[1,128], index: 2, kind: input, shape index: {}]   ;;  %s2183_s3 = inlined_call_operand.vmem [shape: f32[512,128], index: 3, kind: output, shape index: {}]  }
   0x1   :  { %v870_v0 = vld [vmem:[%s2180_s0] sm:$0xff]   ;;  %v997_v4 = vld [vmem:[%s2180_s0 + $0x8] sm:$0xff]   ;;  %v998_v5 = vld [vmem:[%s2180_s0 + $0x10] sm:$0xff]  }
   0x2   :  { %v1312_v1 = vld [vmem:[%s2181_s1] ss:$0 sm:$0xff]  ;;  %v871_v2 = vunpack.c.l.bf16 %v870_v0  ;;  %v872_v3 = vunpack.c.h.bf16 %v870_v0  ;;  %v999_v6 = vld [vmem:[%s2180_s0 + $0x18] sm:$0xff]   ;;  %v875_v8 = vunpack.c.l.bf16 %v997_v4  ;;  %v876_v9 = vunpack.c.h.bf16 %v997_v4  ;;  %v1001_v42 = vld [vmem:[%s2180_s0 + $0x28] sm:$0xff]  }
   0x3   :  { %v1326_v7 = vld [vmem:[%s2182_s2] ss:$0 sm:$0xff]  ;;  %v879_v10 = vunpack.c.l.bf16 %v998_v5  ;;  %v880_v11 = vunpack.c.h.bf16 %v998_v5  ;;  %v883_v14 = vunpack.c.l.bf16 %v999_v6  ;;  %v884_v30 = vunpack.c.h.bf16 %v999_v6  ;;  %v1002_v47 = vld [vmem:[%s2180_s0 + $0x30] sm:$0xff]  }
   0x4   :  { %v149_v12 = vmul.f32 %v871_v2, %v1312_v1  ;;  %v150_v13 = vmul.f32 %v872_v3, %v1312_v1  ;;  %v151_v15 = vmul.f32 %v875_v8, %v1312_v1  ;;  %v152_v16 = vmul.f32 %v876_v9, %v1312_v1  ;;  %v1000_v39 = vld [vmem:[%s2180_s0 + $0x20] sm:$0xff]  }
   0x5   :  { %v153_v17 = vmul.f32 %v879_v10, %v1312_v1  ;;  %v154_v18 = vmul.f32 %v880_v11, %v1312_v1  ;;  %v155_v29 = vmul.f32 %v883_v14, %v1312_v1  ;;  %v156_v38 = vmul.f32 %v884_v30, %v1312_v1 }
   0x6   :  { %v1335_v19 = vadd.f32 %v1326_v7, %v149_v12  ;;  %v1338_v20 = vadd.f32 %v1326_v7, %v150_v13  ;;  %v1341_v21 = vadd.f32 %v1326_v7, %v151_v15  ;;  %v1344_v22 = vadd.f32 %v1326_v7, %v152_v16 }
   0x7   :  { %v1349_v25 = vadd.f32 %v1326_v7, %v153_v17  ;;  %v1352_v26 = vadd.f32 %v1326_v7, %v154_v18  ;;  %v1360_v37 = vadd.f32 %v1326_v7, %v155_v29  ;;  %v1371_v44 = vadd.f32 %v1326_v7, %v156_v38 }
   0x8   :  { %v284_v23 = vsub.f32 0.0, %v1335_v19  ;;  %v285_v24 = vsub.f32 0.0, %v1338_v20  ;;  %v286_v27 = vsub.f32 0.0, %v1341_v21  ;;  %v287_v28 = vsub.f32 0.0, %v1344_v22 }
   0x9   :  { %v288_v35 = vsub.f32 0.0, %v1349_v25  ;;  %v289_v36 = vsub.f32 0.0, %v1352_v26  ;;  %v290_v43 = vsub.f32 0.0, %v1360_v37  ;;  %v887_v45 = vunpack.c.l.bf16 %v1000_v39 }
   0xa   :  { %v348_v31 = vmul.f32 1.442695, %v284_v23  ;;  %v350_v32 = vmul.f32 1.442695, %v285_v24  ;;  %v352_v33 = vmul.f32 1.442695, %v286_v27  ;;  %v888_v46 = vunpack.c.h.bf16 %v1000_v39 }
   0xb   :  { %v354_v34 = vmul.f32 1.442695, %v287_v28  ;;  %v356_v40 = vmul.f32 1.442695, %v288_v35  ;;  %v358_v41 = vmul.f32 1.442695, %v289_v36  ;;  %v891_v50 = vunpack.c.l.bf16 %v1001_v42 }
   0xc   :  { %1028 = vpow2.f32 %v348_v31  ;;  %v360_v49 = vmul.f32 1.442695, %v290_v43  ;;  %v604_v51 = vmax.f32 %v1335_v19, -4.5  ;;  %v291_v52 = vsub.f32 0.0, %v1371_v44  ;;  %v1003_v28 = vld [vmem:[%s2180_s0 + $0x38] sm:$0xff]  }
   0xd   :  { %1030 = vpow2.f32 %v350_v32  ;;  %v157_v53 = vmul.f32 %v887_v45, %v1312_v1  ;;  %v158_v54 = vmul.f32 %v888_v46, %v1312_v1  ;;  %v159_v55 = vmul.f32 %v891_v50, %v1312_v1 }
   0xe   :  { %1032 = vpow2.f32 %v352_v33  ;;  %v892_v56 = vunpack.c.h.bf16 %v1001_v42  ;;  %v895_v57 = vunpack.c.l.bf16 %v1002_v47  ;;  %v605_v58 = vmax.f32 %v1338_v20, -4.5  ;;  %v1004_v33 = vld [vmem:[%s2180_s0 + $0x40] sm:$0xff]  }
   0xf   :  { %1034 = vpow2.f32 %v354_v34  ;;  %v362_v59 = vmul.f32 1.442695, %v291_v52  ;;  %v1383_v60 = vadd.f32 %v1326_v7, %v157_v53  ;;  %v1386_v61 = vadd.f32 %v1326_v7, %v158_v54 }
  0x10   :  { %1036 = vpow2.f32 %v356_v40  ;;  %v606_v62 = vmax.f32 %v1341_v21, -4.5  ;;  %v1390_v63 = vadd.f32 %v1326_v7, %v159_v55  ;;  %v160_v0 = vmul.f32 %v892_v56, %v1312_v1 }
  0x11   :  { %1038 = vpow2.f32 %v358_v41  ;;  %v161_v2 = vmul.f32 %v895_v57, %v1312_v1  ;;  %v607_v3 = vmax.f32 %v1344_v22, -4.5  ;;  %v292_v4 = vsub.f32 0.0, %v1383_v60 }
  0x12   :  { %1040 = vpow2.f32 %v360_v49  ;;  %v293_v5 = vsub.f32 0.0, %v1386_v61  ;;  %v1397_v6 = vand.u32 127, %v732_v48  ;;  %v1400_v8 = vadd.f32 %v1326_v7, %v160_v0 }
  0x13   :  { %1042 = vpow2.f32 %v362_v59  ;;  %v364_v9 = vmul.f32 1.442695, %v292_v4  ;;  %v294_v11 = vsub.f32 0.0, %v1390_v63  ;;  %v1404_v12 = vadd.f32 %v1326_v7, %v161_v2 }
  0x14   :  { %v366_v10 = vmul.f32 1.442695, %v293_v5  ;;  %v1406_v14 = vmin.f32 %v604_v51, 0.0  ;;  %v1408_v15 = vmin.f32 %v605_v58, 0.0  ;;  %v295_v16 = vsub.f32 0.0, %v1400_v8 }
  0x15   :  { %v896_v17 = vunpack.c.h.bf16 %v1002_v47  ;;  %v1411_v20 = vmin.f32 %v606_v62, 0.0  ;;  %v1413_v21 = vmin.f32 %v607_v3, 0.0  ;;  %1044 = vpow2.f32 %v364_v9 }
  0x16   :  { %v608_v24 = vmax.f32 %v1349_v25, -4.5  ;;  %v609_v27 = vmax.f32 %v1352_v26, -4.5  ;;  %1046 = vpow2.f32 %v366_v10  ;;  %v368_v31 = vmul.f32 1.442695, %v294_v11 }
  0x17   :  { %v296_v32 = vsub.f32 0.0, %v1404_v12  ;;  %v370_v35 = vmul.f32 1.442695, %v295_v16  ;;  %v162_v26 = vmul.f32 %v896_v17, %v1312_v1  ;;  %v899_v39 = vunpack.c.l.bf16 %v1003_v28 }
  0x18   :  { %v900_v40 = vunpack.c.h.bf16 %v1003_v28  ;;  %vm734_vm0 = vcmp.lt.s32.totalorder %v1397_v6, 8  ;;  %v903_v43 = vunpack.c.l.bf16 %v1004_v33  ;;  %v904_v48 = vunpack.c.h.bf16 %v1004_v33 }
  0x19   :  { %v1029_v13 = vpop.eup %1028  ;;  %v1427_v42 = vadd.f32 %v1326_v7, %v162_v26  ;;  %v163_v46 = vmul.f32 %v899_v39, %v1312_v1  ;;  %v372_v50 = vmul.f32 1.442695, %v296_v32  ;;  %v610_v56 = vmax.f32 %v1360_v37, -4.5 }
  0x1a   :  { %v1031_v18 = vpop.eup %1030  ;;  %v476_v19 = vadd.f32 1.0, %v1029_v13  ;;  %v164_v47 = vmul.f32 %v900_v40, %v1312_v1  ;;  %v165_v54 = vmul.f32 %v903_v43, %v1312_v1  ;;  %v166_v58 = vmul.f32 %v904_v48, %v1312_v1 }
  0x1b   :  { %v1033_v22 = vpop.eup %1032  ;;  %v477_v23 = vadd.f32 1.0, %v1031_v18  ;;  %v297_v51 = vsub.f32 0.0, %v1427_v42  ;;  %v1433_v52 = vadd.f32 %v1326_v7, %v163_v46  ;;  %v611_v62 = vmax.f32 %v1371_v44, -4.5 }
  0x1c   :  { %v1035_v29 = vpop.eup %1034  ;;  %1048 = vrcp.f32 %v476_v19  ;;  %v478_v30 = vadd.f32 1.0, %v1033_v22  ;;  %v1436_v53 = vadd.f32 %v1326_v7, %v164_v47  ;;  %v672_v2 = vmin.f32 %v608_v24, 0.0  ;;  %v1005_v22 = vld [vmem:[%s2180_s0 + $0x48] sm:$0xff]  }
  0x1d   :  { %v1037_v34 = vpop.eup %1036  ;;  %1050 = vrcp.f32 %v477_v23  ;;  %v479_v25 = vadd.f32 1.0, %v1035_v29  ;;  %v374_v57 = vmul.f32 1.442695, %v297_v51  ;;  %v298_v0 = vsub.f32 0.0, %v1433_v52  ;;  %v1006_v29 = vld [vmem:[%s2180_s0 + $0x50] sm:$0xff]  }
  0x1e   :  { %v1039_v36 = vpop.eup %1038  ;;  %1052 = vrcp.f32 %v478_v30  ;;  %v480_v38 = vadd.f32 1.0, %v1037_v34  ;;  %v299_v3 = vsub.f32 0.0, %v1436_v53  ;;  %v1445_v4 = vadd.f32 %v1326_v7, %v165_v54 }
  0x1f   :  { %1054 = vrcp.f32 %v479_v25  ;;  %v481_v41 = vadd.f32 1.0, %v1039_v36  ;;  %v1041_v45 = vpop.eup %1040  ;;  %v673_v5 = vmin.f32 %v609_v27, 0.0  ;;  %v376_v9 = vmul.f32 1.442695, %v298_v0 }
  0x20   :  { %1056 = vrcp.f32 %v480_v38  ;;  %v482_v49 = vadd.f32 1.0, %v1041_v45  ;;  %v1043_v55 = vpop.eup %1042  ;;  %v1448_v37 = vadd.f32 %v1326_v7, %v166_v58  ;;  %v674_v11 = vmin.f32 %v610_v56, 0.0 }
  0x21   :  { %1058 = vrcp.f32 %v481_v41  ;;  %v483_v59 = vadd.f32 1.0, %v1043_v55  ;;  %v378_v44 = vmul.f32 1.442695, %v299_v3  ;;  %v300_v13 = vsub.f32 0.0, %v1445_v4 }
  0x22   :  { %1060 = vpow2.f32 %v368_v31  ;;  %v1045_v10 = vpop.eup %1044  ;;  %v1451_v17 = vmin.f32 %v611_v62, 0.0  ;;  %v301_v19 = vsub.f32 0.0, %v1448_v37  ;;  %v612_v24 = vmax.f32 %v1383_v60, -4.5 }
  0x23   :  { %1062 = vrcp.f32 %v482_v49  ;;  %v1047_v16 = vpop.eup %1046  ;;  %v484_v18 = vadd.f32 1.0, %v1045_v10  ;;  %v380_v28 = vmul.f32 1.442695, %v300_v13  ;;  %v613_v32 = vmax.f32 %v1386_v61, -4.5 }
  0x24   :  { %1064 = vpow2.f32 %v370_v35  ;;  %v485_v27 = vadd.f32 1.0, %v1047_v16  ;;  %v382_v33 = vmul.f32 1.442695, %v301_v19  ;;  %v614_v25 = vmax.f32 %v1390_v63, -4.5 }
  0x25   :  { %1066 = vpow2.f32 %v372_v50  ;;  %v907_v35 = vunpack.c.l.bf16 %v1005_v22  ;;  %v911_v36 = vunpack.c.l.bf16 %v1006_v29  ;;  %v912_v39 = vunpack.c.h.bf16 %v1006_v29 }
  0x26   :  { %1068 = vrcp.f32 %v483_v59  ;;  %v676_v43 = vmin.f32 %v612_v24, 0.0  ;;  %v677_v54 = vmin.f32 %v613_v32, 0.0  ;;  %v1518_v62 = vmin.f32 %v614_v25, 0.0 }
  0x27   :  { %1070 = vpow2.f32 %v374_v57  ;;  %v169_v46 = vmul.f32 %v911_v36, %v1312_v1  ;;  %v170_v49 = vmul.f32 %v912_v39, %v1312_v1  ;;  %v615_v0 = vmax.f32 %v1400_v8, -4.5 }
  0x28   :  { %1072 = vpow2.f32 %v376_v9 }
  0x29   :  { %v1049_v23 = vpop.eup %1048  ;;  %1074 = vpow2.f32 %v378_v44  ;;  %v1514_v57 = vadd.f32 %v1326_v7, %v169_v46  ;;  %v1527_v10 = vadd.f32 %v1326_v7, %v170_v49 }
  0x2a   :  { %v1051_v30 = vpop.eup %1050  ;;  %v735_v31 = vsel %vm734_vm0, %v1049_v23, %v1406_v14  ;;  %1076 = vrcp.f32 %v484_v18  ;;  %v908_v14 = vunpack.c.h.bf16 %v1005_v22  ;;  %v616_v22 = vmax.f32 %v1404_v12, -4.5 }
  0x2b   :  { %v1053_v34 = vpop.eup %1052  ;;  %799 = vst [vmem:[%s2183_s3] sm:$0xff] %v735_v31  ;;  %v736_v60 = vsel %vm734_vm0, %v1051_v30, %v1408_v15  ;;  %1078 = vrcp.f32 %v485_v27  ;;  %v1481_v15 = vld [vmem:[%s2180_s0 + $0x58] sm:$0xff]   ;;  %v304_v16 = vsub.f32 0.0, %v1514_v57  ;;  %v617_v23 = vmax.f32 %v1427_v42, -4.5 }
  0x2c   :  { %v1055_v26 = vpop.eup %1054  ;;  %800 = vst [vmem:[%s2183_s3 + $0x8] sm:$0xff] %v736_v60  ;;  %v737_v61 = vsel %vm734_vm0, %v1053_v34, %v1411_v20  ;;  %1080 = vpow2.f32 %v380_v28  ;;  %v167_v20 = vmul.f32 %v907_v35, %v1312_v1  ;;  %v168_v45 = vmul.f32 %v908_v14, %v1312_v1  ;;  %v1008_v60 = vld [vmem:[%s2180_s0 + $0x60] sm:$0xff]  }
  0x2d   :  { %v1057_v38 = vpop.eup %1056  ;;  %801 = vst [vmem:[%s2183_s3 + $0x10] sm:$0xff] %v737_v61  ;;  %v738_v63 = vsel %vm734_vm0, %v1055_v26, %v1413_v21  ;;  %1082 = vpow2.f32 %v382_v33  ;;  %v915_v50 = vunpack.c.l.bf16 %v1481_v15  ;;  %v1539_v27 = vmin.f32 %v615_v0, 0.0 }
  0x2e   :  { %v1059_v40 = vpop.eup %1058  ;;  %802 = vst [vmem:[%s2183_s3 + $0x18] sm:$0xff] %v738_v63  ;;  %v739_v41 = vsel %vm734_vm0, %v1057_v38, %v672_v2  ;;  %v1503_v48 = vadd.f32 %v1326_v7, %v167_v20  ;;  %v1511_v56 = vadd.f32 %v1326_v7, %v168_v45  ;;  %v916_v29 = vunpack.c.h.bf16 %v1481_v15 }
  0x2f   :  { %v1061_v47 = vpop.eup %1060  ;;  %803 = vst [vmem:[%s2183_s3 + $0x20] sm:$0xff] %v739_v41  ;;  %v740_v21 = vsel %vm734_vm0, %v1059_v40, %v673_v5  ;;  %v171_v8 = vmul.f32 %v915_v50, %v1312_v1  ;;  %v305_v32 = vsub.f32 0.0, %v1527_v10  ;;  %v388_v33 = vmul.f32 1.442695, %v304_v16  ;;  %v1009_v41 = vld [vmem:[%s2180_s0 + $0x68] sm:$0xff]  }
  0x30   :  { %v1063_v51 = vpop.eup %1062  ;;  %804 = vst [vmem:[%s2183_s3 + $0x28] sm:$0xff] %v740_v21  ;;  %v486_v55 = vadd.f32 1.0, %v1061_v47  ;;  %v302_v2 = vsub.f32 0.0, %v1503_v48  ;;  %v303_v9 = vsub.f32 0.0, %v1511_v56  ;;  %v680_v26 = vmin.f32 %v616_v22, 0.0 }
  0x31   :  { %v1065_v58 = vpop.eup %1064  ;;  %v741_v59 = vsel %vm734_vm0, %v1063_v51, %v674_v11  ;;  %v1544_v34 = vadd.f32 %v1326_v7, %v171_v8  ;;  %v1551_v61 = vmin.f32 %v617_v23, 0.0  ;;  %v390_v15 = vmul.f32 1.442695, %v305_v32 }
  0x32   :  { %v1067_v3 = vpop.eup %1066  ;;  %805 = vst [vmem:[%s2183_s3 + $0x30] sm:$0xff] %v741_v59  ;;  %1084 = vrcp.f32 %v486_v55  ;;  %v487_v5 = vadd.f32 1.0, %v1065_v58  ;;  %v384_v13 = vmul.f32 1.442695, %v302_v2  ;;  %v172_v39 = vmul.f32 %v916_v29, %v1312_v1  ;;  %v1575_v55 = vld [vmem:[%s2180_s0 + $0x70] sm:$0xff]  }
  0x33   :  { %v1069_v44 = vpop.eup %1068  ;;  %v488_v11 = vadd.f32 1.0, %v1067_v3  ;;  %v306_v38 = vsub.f32 0.0, %v1544_v34  ;;  %v919_v40 = vunpack.c.l.bf16 %v1008_v60  ;;  %v920_v49 = vunpack.c.h.bf16 %v1008_v60 }
  0x34   :  { %v1071_v18 = vpop.eup %1070  ;;  %v742_v19 = vsel %vm734_vm0, %v1069_v44, %v1451_v17  ;;  %1086 = vrcp.f32 %v487_v5  ;;  %v386_v17 = vmul.f32 1.442695, %v303_v9  ;;  %v1568_v47 = vadd.f32 %v1326_v7, %v172_v39 }
  0x35   :  { %v1073_v24 = vpop.eup %1072  ;;  %806 = vst [vmem:[%s2183_s3 + $0x38] sm:$0xff] %v742_v19  ;;  %1088 = vrcp.f32 %v488_v11  ;;  %v489_v28 = vadd.f32 1.0, %v1071_v18  ;;  %v392_v46 = vmul.f32 1.442695, %v306_v38  ;;  %v173_v21 = vmul.f32 %v919_v40, %v1312_v1 }
  0x36   :  { %v1075_v30 = vpop.eup %1074  ;;  %v490_v31 = vadd.f32 1.0, %v1073_v24  ;;  %1090 = vpow2.f32 %v384_v13  ;;  %v619_v50 = vmax.f32 %v1436_v53, -4.5  ;;  %v923_v51 = vunpack.c.l.bf16 %v1009_v41 }
  0x37   :  { %v1077_v12 = vpop.eup %1076  ;;  %1092 = vrcp.f32 %v489_v28  ;;  %v491_v42 = vadd.f32 1.0, %v1075_v30  ;;  %v307_v58 = vsub.f32 0.0, %v1568_v47  ;;  %v1580_v59 = vadd.f32 %v1326_v7, %v173_v21 }
  0x38   :  { %v1079_v25 = vpop.eup %1078  ;;  %v743_v35 = vsel %vm734_vm0, %v1077_v12, %v676_v43  ;;  %1094 = vrcp.f32 %v490_v31  ;;  %v618_v43 = vmax.f32 %v1433_v52, -4.5  ;;  %v620_v52 = vmax.f32 %v1445_v4, -4.5 }
  0x39   :  { %v1081_v14 = vpop.eup %1080  ;;  %807 = vst [vmem:[%s2183_s3 + $0x40] sm:$0xff] %v743_v35  ;;  %v744_v36 = vsel %vm734_vm0, %v1079_v25, %v677_v54  ;;  %1096 = vrcp.f32 %v491_v42  ;;  %v924_v54 = vunpack.c.h.bf16 %v1009_v41  ;;  %v174_v53 = vmul.f32 %v920_v49, %v1312_v1 }
  0x3a   :  { %v1083_v63 = vpop.eup %1082  ;;  %808 = vst [vmem:[%s2183_s3 + $0x48] sm:$0xff] %v744_v36  ;;  %v492_v20 = vadd.f32 1.0, %v1081_v14  ;;  %1098 = vpow2.f32 %v386_v17  ;;  %v175_v2 = vmul.f32 %v923_v51, %v1312_v1  ;;  %v394_v9 = vmul.f32 1.442695, %v307_v58 }
  0x3b   :  { %v493_v45 = vadd.f32 1.0, %v1083_v63  ;;  %1100 = vpow2.f32 %v388_v33  ;;  %v176_v3 = vmul.f32 %v924_v54, %v1312_v1  ;;  %v308_v4 = vsub.f32 0.0, %v1580_v59  ;;  %v1012_v54 = vld [vmem:[%s2180_s0 + $0x80] sm:$0xff]  }
  0x3c   :  { %1102 = vrcp.f32 %v492_v20  ;;  %v927_v44 = vunpack.c.l.bf16 %v1575_v55  ;;  %v682_v13 = vmin.f32 %v618_v43, 0.0  ;;  %v1594_v16 = vadd.f32 %v1326_v7, %v174_v53 }
  0x3d   :  { %1104 = vrcp.f32 %v493_v45  ;;  %v1597_v8 = vadd.f32 %v1326_v7, %v175_v2  ;;  %v1600_v18 = vadd.f32 %v1326_v7, %v176_v3  ;;  %v621_v22 = vmax.f32 %v1448_v37, -4.5 }
  0x3e   :  { %1106 = vpow2.f32 %v390_v15  ;;  %v396_v23 = vmul.f32 1.442695, %v308_v4  ;;  %v683_v29 = vmin.f32 %v619_v50, 0.0  ;;  %v684_v30 = vmin.f32 %v620_v52, 0.0 }
  0x3f   :  { %v1085_v0 = vpop.eup %1084  ;;  %1108 = vpow2.f32 %v392_v46  ;;  %v309_v31 = vsub.f32 0.0, %v1594_v16  ;;  %v177_v32 = vmul.f32 %v927_v44, %v1312_v1  ;;  %v622_v33 = vmax.f32 %v1503_v48, -4.5 }
  0x40   :  { %v745_v5 = vsel %vm734_vm0, %v1085_v0, %v1518_v62  ;;  %1110 = vpow2.f32 %v394_v9  ;;  %v311_v25 = vsub.f32 0.0, %v1600_v18  ;;  %v685_v14 = vmin.f32 %v621_v22, 0.0 }
  0x41   :  { %v1087_v11 = vpop.eup %1086  ;;  %809 = vst [vmem:[%s2183_s3 + $0x50] sm:$0xff] %v745_v5  ;;  %1112 = vpow2.f32 %v396_v23  ;;  %v398_v60 = vmul.f32 1.442695, %v309_v31  ;;  %v623_v38 = vmax.f32 %v1511_v56, -4.5  ;;  %v1640_v40 = vadd.f32 %v1326_v7, %v177_v32 }
  0x42   :  { %v1089_v62 = vpop.eup %1088  ;;  %v746_v19 = vsel %vm734_vm0, %v1087_v11, %v1539_v27  ;;  %v310_v27 = vsub.f32 0.0, %v1597_v8  ;;  %v402_v63 = vmul.f32 1.442695, %v311_v25  ;;  %v928_v41 = vunpack.c.h.bf16 %v1575_v55 }
  0x43   :  { %v1091_v24 = vpop.eup %1090  ;;  %810 = vst [vmem:[%s2183_s3 + $0x58] sm:$0xff] %v746_v19  ;;  %v747_v28 = vsel %vm734_vm0, %v1089_v62, %v680_v26  ;;  %v686_v45 = vmin.f32 %v622_v33, 0.0  ;;  %v624_v50 = vmax.f32 %v1514_v57, -4.5  ;;  %v312_v51 = vsub.f32 0.0, %v1640_v40 }
  0x44   :  { %v1093_v17 = vpop.eup %1092  ;;  %811 = vst [vmem:[%s2183_s3 + $0x60] sm:$0xff] %v747_v28  ;;  %v494_v37 = vadd.f32 1.0, %v1091_v24  ;;  %v400_v36 = vmul.f32 1.442695, %v310_v27  ;;  %v178_v58 = vmul.f32 %v928_v41, %v1312_v1  ;;  %v687_v53 = vmin.f32 %v623_v38, 0.0 }
  0x45   :  { %v1095_v12 = vpop.eup %1094  ;;  %v748_v42 = vsel %vm734_vm0, %v1093_v17, %v1551_v61  ;;  %v1011_v61 = vld [vmem:[%s2180_s0 + $0x78] sm:$0xff]   ;;  %v404_v3 = vmul.f32 1.442695, %v312_v51  ;;  %v935_v11 = vunpack.c.l.bf16 %v1012_v54  ;;  %v688_v62 = vmin.f32 %v624_v50, 0.0 }
  0x46   :  { %v1097_v35 = vpop.eup %1096  ;;  %812 = vst [vmem:[%s2183_s3 + $0x68] sm:$0xff] %v748_v42  ;;  %v749_v26 = vsel %vm734_vm0, %v1095_v12, %v682_v13  ;;  %1114 = vrcp.f32 %v494_v37  ;;  %v931_v21 = vunpack.c.l.bf16 %v1011_v61  ;;  %v932_v5 = vunpack.c.h.bf16 %v1011_v61  ;;  %v1669_v13 = vld [vmem:[%s2180_s0 + $0x88] sm:$0xff]  }
  0x47   :  { %v1099_v15 = vpop.eup %1098  ;;  %813 = vst [vmem:[%s2183_s3 + $0x70] sm:$0xff] %v749_v26  ;;  %v750_v48 = vsel %vm734_vm0, %v1097_v35, %v683_v29  ;;  %1116 = vpow2.f32 %v398_v60  ;;  %v1661_v4 = vadd.f32 %v1326_v7, %v178_v58  ;;  %v625_v19 = vmax.f32 %v1527_v10, -4.5 }
  0x48   :  { %v1101_v20 = vpop.eup %1100  ;;  %814 = vst [vmem:[%s2183_s3 + $0x78] sm:$0xff] %v750_v48  ;;  %v495_v39 = vadd.f32 1.0, %v1099_v15  ;;  %1118 = vpow2.f32 %v400_v36  ;;  %v179_v0 = vmul.f32 %v931_v21, %v1312_v1  ;;  %v180_v22 = vmul.f32 %v932_v5, %v1312_v1 }
  0x49   :  { %v1103_v43 = vpop.eup %1102  ;;  %v496_v46 = vadd.f32 1.0, %v1101_v20  ;;  %1120 = vpow2.f32 %v402_v63  ;;  %v313_v24 = vsub.f32 0.0, %v1661_v4  ;;  %v936_v29 = vunpack.c.h.bf16 %v1012_v54 }
  0x4a   :  { %v1105_v56 = vpop.eup %1104  ;;  %v751_v49 = vsel %vm734_vm0, %v1103_v43, %v684_v30  ;;  %1122 = vrcp.f32 %v495_v39  ;;  %v1664_v44 = vadd.f32 %v1326_v7, %v179_v0  ;;  %v1676_v31 = vadd.f32 %v1326_v7, %v180_v22 }
  0x4b   :  { %v1107_v52 = vpop.eup %1106  ;;  %815 = vst [vmem:[%s2183_s3 + $0x80] sm:$0xff] %v751_v49  ;;  %v752_v55 = vsel %vm734_vm0, %v1105_v56, %v685_v14  ;;  %1124 = vrcp.f32 %v496_v46  ;;  %v939_v17 = vunpack.c.l.bf16 %v1669_v13  ;;  %v626_v27 = vmax.f32 %v1544_v34, -4.5 }
  0x4c   :  { %v1109_v57 = vpop.eup %1108  ;;  %816 = vst [vmem:[%s2183_s3 + $0x88] sm:$0xff] %v752_v55  ;;  %v497_v2 = vadd.f32 1.0, %v1107_v52  ;;  %v314_v28 = vsub.f32 0.0, %v1664_v44  ;;  %v406_v10 = vmul.f32 1.442695, %v313_v24  ;;  %v181_v12 = vmul.f32 %v935_v11, %v1312_v1  ;;  %v1014_v52 = vld [vmem:[%s2180_s0 + $0x90] sm:$0xff]  }
  0x4d   :  { %v498_v9 = vadd.f32 1.0, %v1109_v57  ;;  %v1111_v23 = vpop.eup %1110  ;;  %v627_v42 = vmax.f32 %v1568_v47, -4.5  ;;  %v315_v60 = vsub.f32 0.0, %v1676_v31  ;;  %v689_v35 = vmin.f32 %v625_v19, 0.0  ;;  %v1015_v24 = vld [vmem:[%s2180_s0 + $0x98] sm:$0xff]  }
  0x4e   :  { %1126 = vrcp.f32 %v497_v2  ;;  %v499_v30 = vadd.f32 1.0, %v1111_v23  ;;  %v1113_v37 = vpop.eup %1112  ;;  %v408_v32 = vmul.f32 1.442695, %v314_v28  ;;  %v1684_v26 = vadd.f32 %v1326_v7, %v181_v12 }
  0x4f   :  { %1128 = vrcp.f32 %v498_v9  ;;  %v500_v33 = vadd.f32 1.0, %v1113_v37  ;;  %v182_v14 = vmul.f32 %v936_v29, %v1312_v1  ;;  %v410_v61 = vmul.f32 1.442695, %v315_v60 }
  0x50   :  { %1130 = vpow2.f32 %v404_v3  ;;  %v183_v15 = vmul.f32 %v939_v17, %v1312_v1  ;;  %v690_v48 = vmin.f32 %v626_v27, 0.0  ;;  %v316_v63 = vsub.f32 0.0, %v1684_v26 }
  0x51   :  { %1132 = vrcp.f32 %v499_v30  ;;  %v691_v39 = vmin.f32 %v627_v42, 0.0  ;;  %v1695_v43 = vadd.f32 %v1326_v7, %v182_v14  ;;  %v628_v51 = vmax.f32 %v1580_v59, -4.5  ;;  %v1016_v42 = vld [vmem:[%s2180_s0 + $0xa0] sm:$0xff]  }
  0x52   :  { %1134 = vpow2.f32 %v406_v10  ;;  %v412_v21 = vmul.f32 1.442695, %v316_v63  ;;  %v1698_v56 = vadd.f32 %v1326_v7, %v183_v15  ;;  %v629_v58 = vmax.f32 %v1594_v16, -4.5 }
  0x53   :  { %v1115_v25 = vpop.eup %1114  ;;  %1136 = vrcp.f32 %v500_v33  ;;  %v317_v54 = vsub.f32 0.0, %v1695_v43  ;;  %v630_v59 = vmax.f32 %v1597_v8, -4.5  ;;  %v631_v3 = vmax.f32 %v1600_v18, -4.5 }
  0x54   :  { %v1117_v36 = vpop.eup %1116  ;;  %v753_v34 = vsel %vm734_vm0, %v1115_v25, %v686_v45  ;;  %1138 = vpow2.f32 %v408_v32  ;;  %v318_v0 = vsub.f32 0.0, %v1698_v56  ;;  %v943_v9 = vunpack.c.l.bf16 %v1014_v52 }
  0x55   :  { %v1119_v47 = vpop.eup %1118  ;;  %817 = vst [vmem:[%s2183_s3 + $0x90] sm:$0xff] %v753_v34  ;;  %v501_v38 = vadd.f32 1.0, %v1117_v36  ;;  %1140 = vpow2.f32 %v410_v61  ;;  %v414_v57 = vmul.f32 1.442695, %v317_v54  ;;  %v944_v11 = vunpack.c.h.bf16 %v1014_v52 }
  0x56   :  { %v1121_v20 = vpop.eup %1120  ;;  %v502_v41 = vadd.f32 1.0, %v1119_v47  ;;  %v416_v5 = vmul.f32 1.442695, %v318_v0  ;;  %v692_v19 = vmin.f32 %v628_v51, 0.0  ;;  %v185_v18 = vmul.f32 %v943_v9, %v1312_v1 }
  0x57   :  { %v1123_v45 = vpop.eup %1122  ;;  %1142 = vrcp.f32 %v501_v38  ;;  %v503_v46 = vadd.f32 1.0, %v1121_v20  ;;  %v693_v28 = vmin.f32 %v629_v58, 0.0  ;;  %v694_v29 = vmin.f32 %v630_v59, 0.0 }
  0x58   :  { %v1125_v49 = vpop.eup %1124  ;;  %v754_v50 = vsel %vm734_vm0, %v1123_v45, %v687_v53  ;;  %1144 = vrcp.f32 %v502_v41  ;;  %v940_v53 = vunpack.c.h.bf16 %v1669_v13  ;;  %v186_v13 = vmul.f32 %v944_v11, %v1312_v1 }
  0x59   :  { %818 = vst [vmem:[%s2183_s3 + $0x98] sm:$0xff] %v754_v50  ;;  %v755_v55 = vsel %vm734_vm0, %v1125_v49, %v688_v62  ;;  %1146 = vrcp.f32 %v503_v46  ;;  %v695_v27 = vmin.f32 %v631_v3, 0.0  ;;  %v632_v10 = vmax.f32 %v1640_v40, -4.5 }
  0x5a   :  { %819 = vst [vmem:[%s2183_s3 + $0xa0] sm:$0xff] %v755_v55  ;;  %1148 = vpow2.f32 %v412_v21  ;;  %v184_v22 = vmul.f32 %v940_v53, %v1312_v1  ;;  %v1741_v32 = vadd.f32 %v1326_v7, %v185_v18  ;;  %v1744_v12 = vadd.f32 %v1326_v7, %v186_v13  ;;  %v1017_v18 = vld [vmem:[%s2180_s0 + $0xa8] sm:$0xff]  }
  0x5b   :  { %v1127_v2 = vpop.eup %1126  ;;  %1150 = vpow2.f32 %v414_v57  ;;  %v948_v61 = vunpack.c.h.bf16 %v1015_v24  ;;  %v951_v38 = vunpack.c.l.bf16 %v1016_v42  ;;  %v952_v63 = vunpack.c.h.bf16 %v1016_v42 }
  0x5c   :  { %v1129_v16 = vpop.eup %1128  ;;  %v756_v62 = vsel %vm734_vm0, %v1127_v2, %v689_v35  ;;  %1152 = vpow2.f32 %v416_v5  ;;  %v1737_v17 = vadd.f32 %v1326_v7, %v184_v22  ;;  %v947_v35 = vunpack.c.l.bf16 %v1015_v24 }
  0x5d   :  { %v1131_v23 = vpop.eup %1130  ;;  %820 = vst [vmem:[%s2183_s3 + $0xa8] sm:$0xff] %v756_v62  ;;  %v757_v8 = vsel %vm734_vm0, %v1129_v16, %v690_v48  ;;  %v320_v36 = vsub.f32 0.0, %v1741_v32  ;;  %v321_v34 = vsub.f32 0.0, %v1744_v12  ;;  %v634_v21 = vmax.f32 %v1664_v44, -4.5 }
  0x5e   :  { %821 = vst [vmem:[%s2183_s3 + $0xb0] sm:$0xff] %v757_v8  ;;  %v504_v30 = vadd.f32 1.0, %v1131_v23  ;;  %v1133_v37 = vpop.eup %1132  ;;  %v319_v25 = vsub.f32 0.0, %v1737_v17  ;;  %v187_v52 = vmul.f32 %v947_v35, %v1312_v1  ;;  %v188_v55 = vmul.f32 %v948_v61, %v1312_v1 }
  0x5f   :  { %v1135_v33 = vpop.eup %1134  ;;  %v758_v60 = vsel %vm734_vm0, %v1133_v37, %v691_v39  ;;  %v633_v39 = vmax.f32 %v1661_v4, -4.5  ;;  %v420_v45 = vmul.f32 1.442695, %v320_v36  ;;  %v422_v50 = vmul.f32 1.442695, %v321_v34 }
  0x60   :  { %1154 = vrcp.f32 %v504_v30  ;;  %v1137_v14 = vpop.eup %1136  ;;  %822 = vst [vmem:[%s2183_s3 + $0xb8] sm:$0xff] %v758_v60  ;;  %v505_v40 = vadd.f32 1.0, %v1135_v33  ;;  %v418_v48 = vmul.f32 1.442695, %v319_v25  ;;  %v189_v44 = vmul.f32 %v951_v38, %v1312_v1  ;;  %v1821_v34 = vld [vmem:[%s2181_s1] ss:$0 sm:$0xff] }
  0x61   :  { %v1139_v15 = vpop.eup %1138  ;;  %v759_v47 = vsel %vm734_vm0, %v1137_v14, %v692_v19  ;;  %v190_v0 = vmul.f32 %v952_v63, %v1312_v1  ;;  %v1781_v53 = vadd.f32 %v1326_v7, %v187_v52  ;;  %v1784_v2 = vadd.f32 %v1326_v7, %v188_v55  ;;  %v1812_v14 = vld [vmem:[%s2180_s0 + $0xb8] sm:$0xff]  }
  0x62   :  { %v1141_v20 = vpop.eup %1140  ;;  %823 = vst [vmem:[%s2183_s3 + $0xc0] sm:$0xff] %v759_v47  ;;  %1156 = vrcp.f32 %v505_v40  ;;  %v506_v41 = vadd.f32 1.0, %v1139_v15  ;;  %v635_v1 = vmax.f32 %v1676_v31, -4.5  ;;  %v1791_v5 = vadd.f32 %v1326_v7, %v189_v44 }
  0x63   :  { %v507_v49 = vadd.f32 1.0, %v1141_v20  ;;  %1158 = vpow2.f32 %v418_v48  ;;  %v636_v11 = vmax.f32 %v1684_v26, -4.5  ;;  %v322_v16 = vsub.f32 0.0, %v1781_v53  ;;  %v1018_v26 = vld [vmem:[%s2180_s0 + $0xb0] sm:$0xff]   ;;  %v1831_v20 = vld [vmem:[%s2182_s2] ss:$0 sm:$0xff] }
  0x64   :  { %v1143_v46 = vpop.eup %1142  ;;  %1160 = vrcp.f32 %v506_v41  ;;  %v323_v62 = vsub.f32 0.0, %v1784_v2  ;;  %v1797_v19 = vadd.f32 %v1326_v7, %v190_v0  ;;  %v696_v23 = vmin.f32 %v632_v10, 0.0 }
  0x65   :  { %v1145_v51 = vpop.eup %1144  ;;  %v760_v54 = vsel %vm734_vm0, %v1143_v46, %v693_v28  ;;  %1162 = vrcp.f32 %v507_v49  ;;  %v324_v31 = vsub.f32 0.0, %v1791_v5  ;;  %v697_v13 = vmin.f32 %v633_v39, 0.0 }
  0x66   :  { %v1147_v58 = vpop.eup %1146  ;;  %824 = vst [vmem:[%s2183_s3 + $0xc8] sm:$0xff] %v760_v54  ;;  %v761_v4 = vsel %vm734_vm0, %v1145_v51, %v694_v29  ;;  %1164 = vpow2.f32 %v420_v45  ;;  %v424_v28 = vmul.f32 1.442695, %v322_v16  ;;  %v426_v29 = vmul.f32 1.442695, %v323_v62 }
  0x67   :  { %v1149_v59 = vpop.eup %1148  ;;  %825 = vst [vmem:[%s2183_s3 + $0xd0] sm:$0xff] %v761_v4  ;;  %v762_v57 = vsel %vm734_vm0, %v1147_v58, %v695_v27  ;;  %1166 = vpow2.f32 %v422_v50  ;;  %v698_v7 = vmin.f32 %v634_v21, 0.0  ;;  %v699_v30 = vmin.f32 %v635_v1, 0.0 }
  0x68   :  { %826 = vst [vmem:[%s2183_s3 + $0xd8] sm:$0xff] %v762_v57  ;;  %v508_v3 = vadd.f32 1.0, %v1149_v59  ;;  %v1151_v9 = vpop.eup %1150  ;;  %v428_v37 = vmul.f32 1.442695, %v324_v31  ;;  %v700_v10 = vmin.f32 %v636_v11, 0.0  ;;  %v325_v42 = vsub.f32 0.0, %v1797_v19 }
  0x69   :  { %v1153_v22 = vpop.eup %1152  ;;  %v509_v8 = vadd.f32 1.0, %v1151_v9  ;;  %v955_v33 = vunpack.c.l.bf16 %v1017_v18  ;;  %v956_v25 = vunpack.c.h.bf16 %v1017_v18  ;;  %v959_v35 = vunpack.c.l.bf16 %v1018_v26 }
  0x6a   :  { %1168 = vrcp.f32 %v508_v3  ;;  %v510_v24 = vadd.f32 1.0, %v1153_v22  ;;  %v637_v40 = vmax.f32 %v1695_v43, -4.5  ;;  %v430_v36 = vmul.f32 1.442695, %v325_v42 }
  0x6b   :  { %1170 = vrcp.f32 %v509_v8  ;;  %v191_v61 = vmul.f32 %v1821_v34, %v955_v33  ;;  %v192_v47 = vmul.f32 %v1821_v34, %v956_v25  ;;  %v193_v48 = vmul.f32 %v1821_v34, %v959_v35 }
  0x6c   :  { %1172 = vrcp.f32 %v510_v24  ;;  %v960_v38 = vunpack.c.h.bf16 %v1018_v26  ;;  %v963_v41 = vunpack.c.l.bf16 %v1812_v14  ;;  %v638_v46 = vmax.f32 %v1698_v56, -4.5 }
  0x6d   :  { %v1155_v27 = vpop.eup %1154  ;;  %1174 = vpow2.f32 %v424_v28  ;;  %v1834_v39 = vadd.f32 %v1831_v20, %v191_v61  ;;  %v1842_v49 = vadd.f32 %v1831_v20, %v192_v47  ;;  %v1845_v50 = vadd.f32 %v1831_v20, %v193_v48  ;;  %v1021_v48 = vld [vmem:[%s2180_s0 + $0xc8] sm:$0xff]  }
  0x6e   :  { %v763_v60 = vsel %vm734_vm0, %v1155_v27, %v696_v23  ;;  %1176 = vpow2.f32 %v426_v29  ;;  %v194_v55 = vmul.f32 %v1821_v34, %v960_v38  ;;  %v195_v58 = vmul.f32 %v1821_v34, %v963_v41 }
  0x6f   :  { %827 = vst [vmem:[%s2183_s3 + $0xe0] sm:$0xff] %v763_v60  ;;  %v1157_v15 = vpop.eup %1156  ;;  %1178 = vpow2.f32 %v428_v37  ;;  %v326_v52 = vsub.f32 0.0, %v1834_v39  ;;  %v701_v44 = vmin.f32 %v637_v40, 0.0  ;;  %v327_v0 = vsub.f32 0.0, %v1842_v49  ;;  %v1020_v37 = vld [vmem:[%s2180_s0 + $0xc0] sm:$0xff]  }
  0x70   :  { %v1159_v63 = vpop.eup %1158  ;;  %v764_v43 = vsel %vm734_vm0, %v1157_v15, %v697_v13  ;;  %1180 = vpow2.f32 %v430_v36  ;;  %v639_v57 = vmax.f32 %v1737_v17, -4.5  ;;  %v328_v9 = vsub.f32 0.0, %v1845_v50 }
  0x71   :  { %v1161_v45 = vpop.eup %1160  ;;  %828 = vst [vmem:[%s2183_s3 + $0xe8] sm:$0xff] %v764_v43  ;;  %v511_v21 = vadd.f32 1.0, %v1159_v63  ;;  %v432_v3 = vmul.f32 1.442695, %v326_v52  ;;  %v702_v11 = vmin.f32 %v638_v46, 0.0  ;;  %v640_v16 = vmax.f32 %v1741_v32, -4.5 }
  0x72   :  { %v1163_v51 = vpop.eup %1162  ;;  %v765_v54 = vsel %vm734_vm0, %v1161_v45, %v698_v7  ;;  %v434_v22 = vmul.f32 1.442695, %v327_v0  ;;  %v436_v8 = vmul.f32 1.442695, %v328_v9  ;;  %v1865_v31 = vadd.f32 %v1831_v20, %v194_v55 }
  0x73   :  { %v1165_v4 = vpop.eup %1164  ;;  %829 = vst [vmem:[%s2183_s3 + $0xf0] sm:$0xff] %v765_v54  ;;  %v766_v56 = vsel %vm734_vm0, %v1163_v51, %v699_v30  ;;  %1182 = vrcp.f32 %v511_v21  ;;  %v1868_v18 = vadd.f32 %v1831_v20, %v195_v58  ;;  %v641_v26 = vmax.f32 %v1744_v12, -4.5  ;;  %v1906_v21 = vld [vmem:[%s2180_s0 + $0xd0] sm:$0xff]  }
  0x74   :  { %v1167_v59 = vpop.eup %1166  ;;  %830 = vst [vmem:[%s2183_s3 + $0xf8] sm:$0xff] %v766_v56  ;;  %v512_v1 = vadd.f32 1.0, %v1165_v4  ;;  %v964_v13 = vunpack.c.h.bf16 %v1812_v14  ;;  %v703_v24 = vmin.f32 %v639_v57, 0.0  ;;  %v329_v28 = vsub.f32 0.0, %v1865_v31 }
  0x75   :  { %v513_v62 = vadd.f32 1.0, %v1167_v59  ;;  %v330_v30 = vsub.f32 0.0, %v1868_v18  ;;  %v704_v42 = vmin.f32 %v640_v16, 0.0  ;;  %v705_v25 = vmin.f32 %v641_v26, 0.0 }
  0x76   :  { %1184 = vrcp.f32 %v512_v1  ;;  %v196_v12 = vmul.f32 %v1821_v34, %v964_v13  ;;  %v438_v33 = vmul.f32 1.442695, %v329_v28  ;;  %v642_v14 = vmax.f32 %v1781_v53, -4.5 }
  0x77   :  { %v1169_v23 = vpop.eup %1168  ;;  %1186 = vrcp.f32 %v513_v62  ;;  %v967_v15 = vunpack.c.l.bf16 %v1020_v37  ;;  %v968_v47 = vunpack.c.h.bf16 %v1020_v37  ;;  %v440_v43 = vmul.f32 1.442695, %v330_v30 }
  0x78   :  { %v767_v17 = vsel %vm734_vm0, %v1169_v23, %v700_v10  ;;  %v1171_v32 = vpop.eup %1170  ;;  %1188 = vpow2.f32 %v432_v3  ;;  %v1895_v40 = vadd.f32 %v1831_v20, %v196_v12  ;;  %v643_v51 = vmax.f32 %v1784_v2, -4.5 }
  0x79   :  { %831 = vst [vmem:[%s2183_s3 + $0x100] sm:$0xff] %v767_v17  ;;  %v1173_v29 = vpop.eup %1172  ;;  %v768_v7 = vsel %vm734_vm0, %v1171_v32, %v701_v44  ;;  %1190 = vpow2.f32 %v434_v22  ;;  %v197_v45 = vmul.f32 %v1821_v34, %v967_v15  ;;  %v198_v46 = vmul.f32 %v1821_v34, %v968_v47 }
  0x7a   :  { %v1175_v27 = vpop.eup %1174  ;;  %832 = vst [vmem:[%s2183_s3 + $0x108] sm:$0xff] %v768_v7  ;;  %v769_v10 = vsel %vm734_vm0, %v1173_v29, %v702_v11  ;;  %1192 = vpow2.f32 %v436_v8  ;;  %v331_v41 = vsub.f32 0.0, %v1895_v40  ;;  %v971_v52 = vunpack.c.l.bf16 %v1021_v48 }
  0x7b   :  { %v1177_v60 = vpop.eup %1176  ;;  %833 = vst [vmem:[%s2183_s3 + $0x110] sm:$0xff] %v769_v10  ;;  %v514_v35 = vadd.f32 1.0, %v1175_v27  ;;  %1194 = vpow2.f32 %v438_v33  ;;  %v1910_v58 = vadd.f32 %v1831_v20, %v197_v45  ;;  %v1913_v4 = vadd.f32 %v1831_v20, %v198_v46 }
  0x7c   :  { %v1179_v36 = vpop.eup %1178  ;;  %v515_v61 = vadd.f32 1.0, %v1177_v60  ;;  %v442_v54 = vmul.f32 1.442695, %v331_v41  ;;  %v972_v56 = vunpack.c.h.bf16 %v1021_v48  ;;  %v199_v0 = vmul.f32 %v1821_v34, %v971_v52 }
  0x7d   :  { %v1181_v38 = vpop.eup %1180  ;;  %1196 = vrcp.f32 %v514_v35  ;;  %v516_v63 = vadd.f32 1.0, %v1179_v36  ;;  %v975_v2 = vunpack.c.l.bf16 %v1906_v21  ;;  %v644_v59 = vmax.f32 %v1791_v5, -4.5  ;;  %v1023_v36 = vld [vmem:[%s2180_s0 + $0xd8] sm:$0xff]  }
  0x7e   :  { %1198 = vrcp.f32 %v515_v61  ;;  %v517_v53 = vadd.f32 1.0, %v1181_v38  ;;  %v332_v57 = vsub.f32 0.0, %v1910_v58  ;;  %v333_v1 = vsub.f32 0.0, %v1913_v4  ;;  %v1024_v38 = vld [vmem:[%s2180_s0 + $0xe0] sm:$0xff]  }
  0x7f   :  { %1200 = vrcp.f32 %v516_v63  ;;  %v706_v9 = vmin.f32 %v642_v14, 0.0  ;;  %v1926_v11 = vadd.f32 %v1831_v20, %v199_v0  ;;  %v200_v16 = vmul.f32 %v1821_v34, %v972_v56 }
  0x80   :  { %v1183_v55 = vpop.eup %1182  ;;  %1202 = vrcp.f32 %v517_v53  ;;  %v201_v62 = vmul.f32 %v1821_v34, %v975_v2  ;;  %v645_v5 = vmax.f32 %v1797_v19, -4.5  ;;  %v444_v8 = vmul.f32 1.442695, %v332_v57 }
  0x81   :  { %v770_v44 = vsel %vm734_vm0, %v1183_v55, %v703_v24  ;;  %1204 = vpow2.f32 %v440_v43  ;;  %v446_v17 = vmul.f32 1.442695, %v333_v1  ;;  %v707_v32 = vmin.f32 %v643_v51, 0.0 }
  0x82   :  { %834 = vst [vmem:[%s2183_s3 + $0x118] sm:$0xff] %v770_v44  ;;  %1206 = vpow2.f32 %v442_v54  ;;  %v646_v24 = vmax.f32 %v1834_v39, -4.5  ;;  %v334_v28 = vsub.f32 0.0, %v1926_v11  ;;  %v1944_v7 = vadd.f32 %v1831_v20, %v200_v16 }
  0x83   :  { %v1185_v3 = vpop.eup %1184  ;;  %1208 = vpow2.f32 %v444_v8  ;;  %v1947_v30 = vadd.f32 %v1831_v20, %v201_v62  ;;  %v708_v37 = vmin.f32 %v644_v59, 0.0  ;;  %v709_v10 = vmin.f32 %v645_v5, 0.0 }
  0x84   :  { %v1187_v22 = vpop.eup %1186  ;;  %v771_v23 = vsel %vm734_vm0, %v1185_v3, %v704_v42  ;;  %1210 = vpow2.f32 %v446_v17  ;;  %v448_v39 = vmul.f32 1.442695, %v334_v28  ;;  %v335_v33 = vsub.f32 0.0, %v1944_v7 }
  0x85   :  { %v1189_v26 = vpop.eup %1188  ;;  %835 = vst [vmem:[%s2183_s3 + $0x120] sm:$0xff] %v771_v23  ;;  %v772_v13 = vsel %vm734_vm0, %v1187_v22, %v705_v25  ;;  %v647_v25 = vmax.f32 %v1842_v49, -4.5  ;;  %v336_v35 = vsub.f32 0.0, %v1947_v30  ;;  %v976_v14 = vunpack.c.h.bf16 %v1906_v21 }
  0x86   :  { %v1191_v29 = vpop.eup %1190  ;;  %836 = vst [vmem:[%s2183_s3 + $0x128] sm:$0xff] %v772_v13  ;;  %v518_v19 = vadd.f32 1.0, %v1189_v26  ;;  %v1956_v15 = vmin.f32 %v646_v24, 0.0  ;;  %v450_v48 = vmul.f32 1.442695, %v335_v33  ;;  %v648_v43 = vmax.f32 %v1845_v50, -4.5 }
  0x87   :  { %v1193_v12 = vpop.eup %1192  ;;  %v519_v27 = vadd.f32 1.0, %v1191_v29  ;;  %v452_v41 = vmul.f32 1.442695, %v336_v35  ;;  %v202_v46 = vmul.f32 %v1821_v34, %v976_v14  ;;  %v979_v21 = vunpack.c.l.bf16 %v1023_v36 }
  0x88   :  { %1212 = vrcp.f32 %v518_v19  ;;  %v520_v42 = vadd.f32 1.0, %v1193_v12  ;;  %v1195_v60 = vpop.eup %1194  ;;  %v980_v54 = vunpack.c.h.bf16 %v1023_v36  ;;  %v983_v52 = vunpack.c.l.bf16 %v1024_v38 }
  0x89   :  { %1214 = vrcp.f32 %v519_v27  ;;  %v521_v47 = vadd.f32 1.0, %v1195_v60  ;;  %v1981_v44 = vadd.f32 %v1831_v20, %v202_v46  ;;  %v203_v0 = vmul.f32 %v1821_v34, %v979_v21  ;;  %v2012_v60 = vld [vmem:[%s2180_s0 + $0xf0] sm:$0xff]  }
  0x8a   :  { %v1197_v61 = vpop.eup %1196  ;;  %1216 = vrcp.f32 %v520_v42  ;;  %v204_v57 = vmul.f32 %v1821_v34, %v980_v54  ;;  %v205_v1 = vmul.f32 %v1821_v34, %v983_v52  ;;  %v984_v3 = vunpack.c.h.bf16 %v1024_v38  ;;  %v1027_v52 = vld [vmem:[%s2180_s0 + $0xf8] sm:$0xff]  }
  0x8b   :  { %v1199_v63 = vpop.eup %1198  ;;  %v773_v49 = vsel %vm734_vm0, %v1197_v61, %v706_v9  ;;  %1218 = vpow2.f32 %v448_v39  ;;  %v649_v9 = vmax.f32 %v1865_v31, -4.5  ;;  %v337_v62 = vsub.f32 0.0, %v1981_v44 }
  0x8c   :  { %v1201_v53 = vpop.eup %1200  ;;  %837 = vst [vmem:[%s2183_s3 + $0x130] sm:$0xff] %v773_v49  ;;  %v774_v45 = vsel %vm734_vm0, %v1199_v63, %v707_v32  ;;  %1220 = vrcp.f32 %v521_v47  ;;  %v1992_v22 = vadd.f32 %v1831_v20, %v203_v0  ;;  %v650_v23 = vmax.f32 %v1868_v18, -4.5 }
  0x8d   :  { %v1203_v51 = vpop.eup %1202  ;;  %838 = vst [vmem:[%s2183_s3 + $0x138] sm:$0xff] %v774_v45  ;;  %v775_v50 = vsel %vm734_vm0, %v1201_v53, %v708_v37  ;;  %1222 = vpow2.f32 %v450_v48  ;;  %v1996_v5 = vadd.f32 %v1831_v20, %v204_v57  ;;  %v1999_v8 = vadd.f32 %v1831_v20, %v205_v1 }
  0x8e   :  { %v1205_v55 = vpop.eup %1204  ;;  %839 = vst [vmem:[%s2183_s3 + $0x140] sm:$0xff] %v775_v50  ;;  %v776_v56 = vsel %vm734_vm0, %v1203_v51, %v709_v10  ;;  %1224 = vpow2.f32 %v452_v41  ;;  %v651_v17 = vmax.f32 %v1895_v40, -4.5  ;;  %v454_v26 = vmul.f32 1.442695, %v337_v62  ;;  %v1025_v40 = vld [vmem:[%s2180_s0 + $0xe8] sm:$0xff]  }
  0x8f   :  { %v1207_v2 = vpop.eup %1206  ;;  %840 = vst [vmem:[%s2183_s3 + $0x148] sm:$0xff] %v776_v56  ;;  %v522_v59 = vadd.f32 1.0, %v1205_v55  ;;  %v338_v31 = vsub.f32 0.0, %v1992_v22  ;;  %v711_v32 = vmin.f32 %v647_v25, 0.0  ;;  %v339_v24 = vsub.f32 0.0, %v1996_v5 }
  0x90   :  { %v523_v16 = vadd.f32 1.0, %v1207_v2  ;;  %v1209_v13 = vpop.eup %1208  ;;  %v340_v28 = vsub.f32 0.0, %v1999_v8  ;;  %v206_v18 = vmul.f32 %v1821_v34, %v984_v3  ;;  %v712_v19 = vmin.f32 %v648_v43, 0.0 }
  0x91   :  { %1226 = vrcp.f32 %v522_v59  ;;  %v1211_v29 = vpop.eup %1210  ;;  %v524_v12 = vadd.f32 1.0, %v1209_v13  ;;  %v456_v37 = vmul.f32 1.442695, %v338_v31  ;;  %v713_v39 = vmin.f32 %v649_v9, 0.0 }
  0x92   :  { %1228 = vrcp.f32 %v523_v16  ;;  %v714_v10 = vmin.f32 %v650_v23, 0.0  ;;  %v525_v42 = vadd.f32 1.0, %v1211_v29  ;;  %v458_v33 = vmul.f32 1.442695, %v339_v24 }
  0x93   :  { %1230 = vpow2.f32 %v454_v26  ;;  %v715_v14 = vmin.f32 %v651_v17, 0.0  ;;  %v460_v36 = vmul.f32 1.442695, %v340_v28  ;;  %v2023_v48 = vadd.f32 %v1831_v20, %v206_v18 }
  0x94   :  { %1232 = vrcp.f32 %v524_v12  ;;  %v987_v38 = vunpack.c.l.bf16 %v1025_v40  ;;  %v988_v49 = vunpack.c.h.bf16 %v1025_v40  ;;  %v991_v43 = vunpack.c.l.bf16 %v2012_v60 }
  0x95   :  { %v1213_v27 = vpop.eup %1212  ;;  %1234 = vrcp.f32 %v525_v42  ;;  %v652_v53 = vmax.f32 %v1910_v58, -4.5  ;;  %v341_v46 = vsub.f32 0.0, %v2023_v48  ;;  %v653_v58 = vmax.f32 %v1913_v4, -4.5 }
  0x96   :  { %v1215_v25 = vpop.eup %1214  ;;  %v777_v35 = vsel %vm734_vm0, %v1213_v27, %v1956_v15  ;;  %1236 = vpow2.f32 %v456_v37  ;;  %v207_v50 = vmul.f32 %v1821_v34, %v987_v38  ;;  %v208_v54 = vmul.f32 %v1821_v34, %v988_v49 }
  0x97   :  { %v1217_v61 = vpop.eup %1216  ;;  %841 = vst [vmem:[%s2183_s3 + $0x150] sm:$0xff] %v777_v35  ;;  %v778_v47 = vsel %vm734_vm0, %v1215_v25, %v711_v32  ;;  %1238 = vpow2.f32 %v458_v33  ;;  %v462_v0 = vmul.f32 1.442695, %v341_v46  ;;  %v209_v1 = vmul.f32 %v1821_v34, %v991_v43 }
  0x98   :  { %v1219_v63 = vpop.eup %1218  ;;  %842 = vst [vmem:[%s2183_s3 + $0x158] sm:$0xff] %v778_v47  ;;  %v779_v15 = vsel %vm734_vm0, %v1217_v61, %v712_v19  ;;  %1240 = vpow2.f32 %v460_v36  ;;  %v2048_v59 = vadd.f32 %v1831_v20, %v207_v50  ;;  %v2051_v57 = vadd.f32 %v1831_v20, %v208_v54 }
  0x99   :  { %v1221_v41 = vpop.eup %1220  ;;  %843 = vst [vmem:[%s2183_s3 + $0x160] sm:$0xff] %v779_v15  ;;  %v526_v45 = vadd.f32 1.0, %v1219_v63  ;;  %v992_v3 = vunpack.c.h.bf16 %v2012_v60  ;;  %v995_v9 = vunpack.c.l.bf16 %v1027_v52  ;;  %v996_v23 = vunpack.c.h.bf16 %v1027_v52 }
  0x9a   :  { %v1223_v21 = vpop.eup %1222  ;;  %v780_v51 = vsel %vm734_vm0, %v1221_v41, %v713_v39  ;;  %v342_v4 = vsub.f32 0.0, %v2048_v59  ;;  %v343_v62 = vsub.f32 0.0, %v2051_v57  ;;  %v716_v31 = vmin.f32 %v652_v53, 0.0 }
  0x9b   :  { %v1225_v55 = vpop.eup %1224  ;;  %844 = vst [vmem:[%s2183_s3 + $0x168] sm:$0xff] %v780_v51  ;;  %1242 = vrcp.f32 %v526_v45  ;;  %v527_v56 = vadd.f32 1.0, %v1223_v21  ;;  %v2060_v13 = vadd.f32 %v1831_v20, %v209_v1  ;;  %v717_v24 = vmin.f32 %v653_v58, 0.0 }
  0x9c   :  { %v528_v2 = vadd.f32 1.0, %v1225_v55  ;;  %v464_v28 = vmul.f32 1.442695, %v342_v4  ;;  %v466_v18 = vmul.f32 1.442695, %v343_v62  ;;  %v654_v19 = vmax.f32 %v1926_v11, -4.5 }
  0x9d   :  { %1244 = vrcp.f32 %v527_v56  ;;  %v655_v12 = vmax.f32 %v1944_v7, -4.5  ;;  %v344_v37 = vsub.f32 0.0, %v2060_v13  ;;  %v210_v40 = vmul.f32 %v1821_v34, %v992_v3 }
  0x9e   :  { %v1227_v16 = vpop.eup %1226  ;;  %1246 = vrcp.f32 %v528_v2  ;;  %v211_v39 = vmul.f32 %v1821_v34, %v995_v9  ;;  %v656_v33 = vmax.f32 %v1947_v30, -4.5  ;;  %v718_v36 = vmin.f32 %v654_v19, 0.0 }
  0x9f   :  { %v1229_v17 = vpop.eup %1228  ;;  %v781_v26 = vsel %vm734_vm0, %v1227_v16, %v714_v10  ;;  %1248 = vpow2.f32 %v462_v0  ;;  %v212_v10 = vmul.f32 %v1821_v34, %v996_v23  ;;  %v468_v60 = vmul.f32 1.442695, %v344_v37 }
  0xa0   :  { %845 = vst [vmem:[%s2183_s3 + $0x170] sm:$0xff] %v781_v26  ;;  %v782_v32 = vsel %vm734_vm0, %v1229_v17, %v715_v14  ;;  %v1231_v29 = vpop.eup %1230  ;;  %1250 = vpow2.f32 %v464_v28  ;;  %v2078_v25 = vadd.f32 %v1831_v20, %v210_v40  ;;  %v2083_v35 = vadd.f32 %v1831_v20, %v211_v39 }
  0xa1   :  { %846 = vst [vmem:[%s2183_s3 + $0x178] sm:$0xff] %v782_v32  ;;  %v529_v27 = vadd.f32 1.0, %v1231_v29  ;;  %v1233_v42 = vpop.eup %1232  ;;  %1252 = vpow2.f32 %v466_v18  ;;  %v2086_v14 = vadd.f32 %v1831_v20, %v212_v10  ;;  %v719_v49 = vmin.f32 %v655_v12, 0.0 }
  0xa2   :  { %v1235_v11 = vpop.eup %1234  ;;  %v783_v7 = vsel %vm734_vm0, %v1233_v42, %v716_v31  ;;  %v345_v61 = vsub.f32 0.0, %v2078_v25  ;;  %v346_v20 = vsub.f32 0.0, %v2083_v35  ;;  %v720_v45 = vmin.f32 %v656_v33, 0.0 }
  0xa3   :  { %1254 = vrcp.f32 %v529_v27  ;;  %v1237_v34 = vpop.eup %1236  ;;  %847 = vst [vmem:[%s2183_s3 + $0x180] sm:$0xff] %v783_v7  ;;  %v784_v30 = vsel %vm734_vm0, %v1235_v11, %v717_v24  ;;  %v347_v63 = vsub.f32 0.0, %v2086_v14  ;;  %v657_v52 = vmax.f32 %v1981_v44, -4.5 }
  0xa4   :  { %1256 = vpow2.f32 %v468_v60  ;;  %v1239_v47 = vpop.eup %1238  ;;  %848 = vst [vmem:[%s2183_s3 + $0x188] sm:$0xff] %v784_v30  ;;  %v530_v38 = vadd.f32 1.0, %v1237_v34  ;;  %v470_v41 = vmul.f32 1.442695, %v345_v61  ;;  %v472_v21 = vmul.f32 1.442695, %v346_v20 }
  0xa5   :  { %v1241_v15 = vpop.eup %1240  ;;  %v531_v43 = vadd.f32 1.0, %v1239_v47  ;;  %v474_v50 = vmul.f32 1.442695, %v347_v63  ;;  %v721_v2 = vmin.f32 %v657_v52, 0.0  ;;  %v658_v1 = vmax.f32 %v1992_v22, -4.5 }
  0xa6   :  { %1258 = vrcp.f32 %v530_v38  ;;  %v532_v46 = vadd.f32 1.0, %v1241_v15  ;;  %v659_v9 = vmax.f32 %v1996_v5, -4.5  ;;  %v660_v4 = vmax.f32 %v1999_v8, -4.5 }
  0xa7   :  { %1260 = vrcp.f32 %v531_v43  ;;  %v722_v32 = vmin.f32 %v658_v1, 0.0  ;;  %v661_v8 = vmax.f32 %v2023_v48, -4.5  ;;  %v662_v40 = vmax.f32 %v2048_v59, -4.5 }
  0xa8   :  { %v1243_v53 = vpop.eup %1242  ;;  %1262 = vrcp.f32 %v532_v46  ;;  %v723_v22 = vmin.f32 %v659_v9, 0.0  ;;  %v724_v24 = vmin.f32 %v660_v4, 0.0  ;;  %v663_v10 = vmax.f32 %v2051_v57, -4.5 }
  0xa9   :  { %v785_v51 = vsel %vm734_vm0, %v1243_v53, %v718_v36  ;;  %1264 = vpow2.f32 %v470_v41  ;;  %v725_v39 = vmin.f32 %v661_v8, 0.0  ;;  %v664_v11 = vmax.f32 %v2060_v13, -4.5 }
  0xaa   :  { %v1245_v54 = vpop.eup %1244  ;;  %849 = vst [vmem:[%s2183_s3 + $0x190] sm:$0xff] %v785_v51  ;;  %1266 = vpow2.f32 %v472_v21  ;;  %v726_v30 = vmin.f32 %v662_v40, 0.0  ;;  %v727_v36 = vmin.f32 %v663_v10, 0.0  ;;  %v665_v20 = vmax.f32 %v2078_v25, -4.5 }
  0xab   :  { %v1247_v55 = vpop.eup %1246  ;;  %v786_v58 = vsel %vm734_vm0, %v1245_v54, %v719_v49  ;;  %1268 = vpow2.f32 %v474_v50  ;;  %v728_v61 = vmin.f32 %v664_v11, 0.0  ;;  %v666_v15 = vmax.f32 %v2083_v35, -4.5 }
  0xac   :  { %v1249_v56 = vpop.eup %1248  ;;  %850 = vst [vmem:[%s2183_s3 + $0x198] sm:$0xff] %v786_v58  ;;  %v787_v0 = vsel %vm734_vm0, %v1247_v55, %v720_v45  ;;  %v667_v43 = vmax.f32 %v2086_v14, -4.5  ;;  %v729_v41 = vmin.f32 %v665_v20, 0.0 }
  0xad   :  { %851 = vst [vmem:[%s2183_s3 + $0x1a0] sm:$0xff] %v787_v0  ;;  %v533_v44 = vadd.f32 1.0, %v1249_v56  ;;  %v1251_v3 = vpop.eup %1250  ;;  %v730_v53 = vmin.f32 %v666_v15, 0.0 }
  0xae   :  { %v1253_v16 = vpop.eup %1252  ;;  %v534_v62 = vadd.f32 1.0, %v1251_v3  ;;  %v731_v45 = vmin.f32 %v667_v43, 0.0 }
  0xaf   :  { %1270 = vrcp.f32 %v533_v44  ;;  %v535_v17 = vadd.f32 1.0, %v1253_v16 }
  0xb0   :  { %v1255_v23 = vpop.eup %1254  ;;  %1272 = vrcp.f32 %v534_v62 }
  0xb1   :  { %v1257_v26 = vpop.eup %1256  ;;  %v788_v31 = vsel %vm734_vm0, %v1255_v23, %v721_v2  ;;  %1274 = vrcp.f32 %v535_v17 }
  0xb2   :  { %852 = vst [vmem:[%s2183_s3 + $0x1a8] sm:$0xff] %v788_v31  ;;  %v536_v5 = vadd.f32 1.0, %v1257_v26 }
  0xb3   :  { %v1259_v28 = vpop.eup %1258 }
  0xb4   :  { %1276 = vrcp.f32 %v536_v5  ;;  %v1261_v18 = vpop.eup %1260  ;;  %v789_v29 = vsel %vm734_vm0, %v1259_v28, %v722_v32 }
  0xb5   :  { %v1263_v19 = vpop.eup %1262  ;;  %853 = vst [vmem:[%s2183_s3 + $0x1b0] sm:$0xff] %v789_v29  ;;  %v790_v12 = vsel %vm734_vm0, %v1261_v18, %v723_v22 }
  0xb6   :  { %v1265_v37 = vpop.eup %1264  ;;  %854 = vst [vmem:[%s2183_s3 + $0x1b8] sm:$0xff] %v790_v12  ;;  %v791_v48 = vsel %vm734_vm0, %v1263_v19, %v724_v24 }
  0xb7   :  { %v1267_v27 = vpop.eup %1266  ;;  %855 = vst [vmem:[%s2183_s3 + $0x1c0] sm:$0xff] %v791_v48  ;;  %v537_v42 = vadd.f32 1.0, %v1265_v37 }
  0xb8   :  { %v1269_v33 = vpop.eup %1268  ;;  %v538_v60 = vadd.f32 1.0, %v1267_v27 }
  0xb9   :  { %1278 = vrcp.f32 %v537_v42  ;;  %v539_v7 = vadd.f32 1.0, %v1269_v33 }
  0xba   :  { %1280 = vrcp.f32 %v538_v60 }
  0xbb   :  { %1282 = vrcp.f32 %v539_v7 }
  0xbc   :  { %v1271_v34 = vpop.eup %1270 }
  0xbd   :  { %v792_v59 = vsel %vm734_vm0, %v1271_v34, %v725_v39  ;;  %v1273_v57 = vpop.eup %1272 }
  0xbe   :  { %856 = vst [vmem:[%s2183_s3 + $0x1c8] sm:$0xff] %v792_v59  ;;  %v1275_v47 = vpop.eup %1274  ;;  %v793_v13 = vsel %vm734_vm0, %v1273_v57, %v726_v30 }
  0xbf   :  { %857 = vst [vmem:[%s2183_s3 + $0x1d0] sm:$0xff] %v793_v13  ;;  %v794_v38 = vsel %vm734_vm0, %v1275_v47, %v727_v36 }
  0xc0   :  { %858 = vst [vmem:[%s2183_s3 + $0x1d8] sm:$0xff] %v794_v38 }
  0xc1   :  { %v1277_v63 = vpop.eup %1276 }
  0xc2   :  { %v795_v49 = vsel %vm734_vm0, %v1277_v63, %v728_v61 }
  0xc3   :  { %859 = vst [vmem:[%s2183_s3 + $0x1e0] sm:$0xff] %v795_v49 }
  0xc6   :  { %v1279_v25 = vpop.eup %1278 }
  0xc7   :  { %v1281_v46 = vpop.eup %1280  ;;  %v796_v21 = vsel %vm734_vm0, %v1279_v25, %v729_v41 }
  0xc8   :  { %v1283_v51 = vpop.eup %1282  ;;  %860 = vst [vmem:[%s2183_s3 + $0x1e8] sm:$0xff] %v796_v21  ;;  %v797_v35 = vsel %vm734_vm0, %v1281_v46, %v730_v53 }
  0xc9   :  { %861 = vst [vmem:[%s2183_s3 + $0x1f0] sm:$0xff] %v797_v35  ;;  %v798_v14 = vsel %vm734_vm0, %v1283_v51, %v731_v45 }
  0xca   :  { %862 = vst [vmem:[%s2183_s3 + $0x1f8] sm:$0xff] %v798_v14 }

</bundles_post_ra>
